<compile_context>
chip_gen: v7x
topology: tpu7x:2x2x1
jax: 0.10.0
libtpu: 0.0.40
codegen_flags: <defaults>
</compile_context>

<pallas_src>
import jax
import jax.numpy as jnp
from jax import lax
from jax.experimental import pallas as pl
from jax.experimental.pallas import tpu as pltpu


# ----------------------------------------------------------------------------
# Fused kernel: feature path + image Conv3d, one grid step per image batch item
# ----------------------------------------------------------------------------
def _fused_kernel(xT_ref, w1_ref, b1_ref, w2_ref, b2_ref, w3_ref, b3_ref,
                  g1_ref, cb1_ref, v_ref, cb2_ref,
                  lhs_ref, ig_ref, ib_ref,
                  feat_o_ref, img_o_ref,
                  cat_ref, c1s_ref):
    f32 = jnp.float32

    # ---- image Conv3d(3->64, k=(2,3,3), s=(2,2,1), p=(4,2,1)) + ReLU ----
    # One dense matmul per batch: (Do*Wo, KD*KW*C*Hp) @ (KD*KW*C*Hp, Ho*OC).
    img = jnp.dot(lhs_ref[0], ig_ref[...], preferred_element_type=f32)
    img_o_ref[0] = jnp.maximum(img + ib_ref[...], 0.0)

    # ---- feature_fc: relu(Linear) x3 on precomp_feats.T ----
    # (Recomputed on every grid step; it is a handful of tiny matmuls and doing so keeps
    #  every output block written by its own grid step - safe under megacore "parallel".)
    h = xT_ref[...]                                                       # (T, F)
    h = jnp.maximum(jnp.dot(h, w1_ref[...], preferred_element_type=f32) + b1_ref[...], 0.0)
    h = jnp.maximum(jnp.dot(h, w2_ref[...], preferred_element_type=f32) + b2_ref[...], 0.0)
    h = jnp.maximum(jnp.dot(h, w3_ref[...], preferred_element_type=f32) + b3_ref[...], 0.0)
    T, Hf = h.shape                                                       # (8, 18)

    # ---- time taps (kernel 3, stride 1, pad 1) via a zero-padded VMEM scratch ----
    # cat_ref rows 1..T end up holding [h[t-1] | h[t] | h[t+1]]; boundary rows stay zero.
    cat_ref[...] = jnp.zeros_like(cat_ref)
    cat_ref[2:T + 2, 0:Hf] = h            # column block j=0  -> h[t-1]
    cat_ref[1:T + 1, Hf:2 * Hf] = h       # column block j=1  -> h[t]
    cat_ref[0:T, 2 * Hf:3 * Hf] = h       # column block j=2  -> h[t+1]
    h_cat = cat_ref[1:T + 1, :]                                           # (T, 3*Hf)

    # ---- feature_conv[0]: Conv2d(1->64) + ReLU as ONE K=3*Hf matmul ----
    # Feature-row / kernel-row selection is pre-folded into g1 (54, 9*64).
    c1 = jnp.maximum(jnp.dot(h_cat, g1_ref[...], preferred_element_type=f32)
                     + cb1_ref[...], 0.0)                                 # (T, 9*64)

    # ---- feature_conv[2]: Conv2d(64->1) + ReLU ----
    # Time shifts of c1 via the same zero-padded scratch trick; channel + row
    # contraction is pre-folded into v (3, 576, 5).
    c1s_ref[...] = jnp.zeros_like(c1s_ref)
    c1s_ref[1:T + 1, :] = c1
    acc2 = jnp.dot(c1s_ref[0:T, :], v_ref[0], preferred_element_type=f32)       # h[t-1] tap
    acc2 = acc2 + jnp.dot(c1, v_ref[1], preferred_element_type=f32)             # h[t]   tap
    acc2 = acc2 + jnp.dot(c1s_ref[2:T + 2, :], v_ref[2], preferred_element_type=f32)  # h[t+1]
    feat_o_ref[0] = jnp.maximum(acc2 + cb2_ref[...], 0.0)                 # (T, 5) sublane-dense


# ----------------------------------------------------------------------------
# Wrapper: build the tiny im2col slab in XLA, launch the single fused kernel
# ----------------------------------------------------------------------------
def _resident_spec(arr):
    shape = tuple(int(s) for s in arr.shape)
    nd = len(shape)
    return pl.BlockSpec(shape, lambda n, _nd=nd: (0,) * _nd)


def baseline_vanilla_forward_impl(precomp_feats, image, params):
    xT = precomp_feats.T.astype(jnp.float32)                              # (T, F)
    T = xT.shape[0]
    (w1, b1), (w2, b2), (w3, b3) = params['fc']
    g1, cb1 = params['feat_g'], params['feat_b1']                         # (54,576), (1,576)
    v, cb2 = params['feat_v'], params['feat_b2']                          # (3,576,5), (1,1)
    ig, ib = params['img_g'], params['img_b']                             # (216,320), (1,320)
    Ho2 = v.shape[2]

    # Module-fixed Conv3d geometry: kernel (2,3,3), stride (2,2,1), padding (4,2,1).
    N, C, D, H, W = image.shape
    KD, KH, KW = 2, 3, 3
    SD, SH, SW = 2, 2, 1
    PD, PH, PW = 4, 2, 1
    Do = (D + 2 * PD - KD) // SD + 1
    Ho = (H + 2 * PH - KH) // SH + 1
    Wo = (W + 2 * PW - KW) // SW + 1
    Dp = SD * (Do - 1) + KD
    Hp = H + 2 * PH
    Wp = W + 2 * PW
    OC = ig.shape[1] // Ho
    Kc = KD * KW * C * Hp

    # One small pad + transpose, then a ~N*Do*Wo*Kc*4-byte im2col slab (acceptable at this
    # size) so the whole Conv3d is ONE dense MXU matmul per batch inside the kernel.
    xp = jnp.pad(image.astype(jnp.float32),
                 ((0, 0), (0, 0), (PD, Dp - D - PD), (PH, PH), (PW, PW)))
    xarr = jnp.transpose(xp, (0, 2, 4, 1, 3)).reshape(N, Dp, Wp, C * Hp)  # (N, Dp, Wp, C*Hp)
    slabs = []
    for a in range(KD):
        for j in range(KW):
            slabs.append(xarr[:, a:a + SD * (Do - 1) + 1:SD, j:j + Wo, :])
    lhs = jnp.concatenate(slabs, axis=-1).reshape(N, Do * Wo, Kc)         # (N, Do*Wo, 216)

    args = (xT, w1, b1, w2, b2, w3, b3, g1, cb1, v, cb2, lhs, ig, ib)
    in_specs = [_resident_spec(a) for a in args[:11]]
    in_specs.append(pl.BlockSpec((1, Do * Wo, Kc), lambda n: (n, 0, 0)))  # per-batch block
    in_specs.append(_resident_spec(ig))
    in_specs.append(_resident_spec(ib))

    flops = 2 * N * (Do * Wo * Kc * Ho * OC
                     + T * xT.shape[1] * w1.shape[1]
                     + T * w1.shape[1] * w2.shape[1]
                     + T * w2.shape[1] * w3.shape[1]
                     + T * g1.shape[0] * g1.shape[1]
                     + 3 * T * v.shape[1] * Ho2)
    bytes_accessed = 4 * (sum(int(a.size) for a in args)
                          + N * T * Ho2 + N * Do * Wo * Ho * OC)

    feat_flat, img_flat = pl.pallas_call(
        _fused_kernel,
        out_shape=(jax.ShapeDtypeStruct((N, T, Ho2), jnp.float32),
                   jax.ShapeDtypeStruct((N, Do * Wo, Ho * OC), jnp.float32)),
        grid=(N,),
        in_specs=in_specs,
        out_specs=(pl.BlockSpec((1, T, Ho2), lambda n: (n, 0, 0)),
                   pl.BlockSpec((1, Do * Wo, Ho * OC), lambda n: (n, 0, 0))),
        scratch_shapes=[pltpu.VMEM((T + 2, 3 * int(w3.shape[1])), jnp.float32),
                        pltpu.VMEM((T + 2, int(v.shape[1])), jnp.float32)],
        compiler_params=pltpu.CompilerParams(dimension_semantics=("parallel",)),
        cost_estimate=pl.CostEstimate(flops=int(flops), transcendentals=0,
                                      bytes_accessed=int(bytes_accessed)),
    )(*args)

    # Cheap XLA epilogues: pick batch-0 copy of the (identical) feature result and
    # convert the lane-dense conv3d output to NCDHW with a single transpose.
    feat_conv_out = feat_flat[0].T.reshape(1, 1, Ho2, T)
    image_conv_out = img_flat.reshape(N, Do, Wo, Ho, OC).transpose(0, 4, 1, 3, 2)
    return feat_conv_out, image_conv_out


baseline_vanilla_forward = jax.jit(baseline_vanilla_forward_impl)


# ----------------------------------------------------------------------------
# Parameters (deterministic, synthetic) + one-time weight folding
# ----------------------------------------------------------------------------
def init_params(key, feature_input_shape, fc_output_shapes=(72, 36, 18)):
    ks = jax.random.split(key, 16)
    params = {}
    fc = []
    fan_in = feature_input_shape
    for li, out in enumerate(fc_output_shapes):
        w = jax.random.normal(ks[2 * li], (fan_in, out), jnp.float32) * (1.0 / jnp.sqrt(fan_in))
        b = jax.random.normal(ks[2 * li + 1], (1, out), jnp.float32) * 0.01
        fc.append((w, b))
        fan_in = out
    params['fc'] = tuple(fc)
    params['conv1_w'] = jax.random.normal(ks[6], (64, 1, 3, 3), jnp.float32) * (1.0 / 3.0)
    params['conv1_b'] = jax.random.normal(ks[7], (64,), jnp.float32) * 0.01
    params['conv2_w'] = jax.random.normal(ks[8], (1, 64, 3, 3), jnp.float32) * (1.0 / jnp.sqrt(64.0 * 9.0))
    params['conv2_b'] = jax.random.normal(ks[9], (1,), jnp.float32) * 0.01
    params['conv3d_w'] = jax.random.normal(ks[10], (64, 3, 2, 3, 3), jnp.float32) * (1.0 / jnp.sqrt(3.0 * 18.0))
    params['conv3d_b'] = jax.random.normal(ks[11], (64,), jnp.float32) * 0.01
    return params


def prepare_params(params, image_height):
    """One-time weight folding so both convs become dense matmuls inside the kernel."""
    p = dict(params)

    # ---- feature conv1 (1->64): fold feature-row/kernel-row selection, merge time taps ----
    c1w, c1b = params['conv1_w'], params['conv1_b']       # (64,1,3,3), (64,)
    c2w, c2b = params['conv2_w'], params['conv2_b']       # (1,64,3,3), (1,)
    Hf = params['fc'][-1][0].shape[1]                     # 18
    Ho1 = (Hf + 2 - 3) // 2 + 1                           # 9
    Ho2 = (Ho1 + 2 - 3) // 2 + 1                          # 5
    OC1 = c1w.shape[0]                                    # 64

    f_idx = jnp.arange(Hf)[:, None]
    y_idx = jnp.arange(Ho1)[None, :]
    i1 = f_idx - 2 * y_idx + 1
    valid1 = (i1 >= 0) & (i1 < 3)
    i1c = jnp.clip(i1, 0, 2)
    g_list = []
    for j in range(3):
        wj = c1w[:, 0, :, j]                              # (64, 3) [oc, i]
        g = wj.T[i1c]                                     # (Hf, Ho1, 64)
        g = jnp.where(valid1[:, :, None], g, 0.0)
        g_list.append(g.reshape(Hf, Ho1 * OC1))
    p['feat_g'] = jnp.concatenate(g_list, axis=0)         # (3*Hf, 576) = (54, 576)
    p['feat_b1'] = jnp.tile(c1b.reshape(1, OC1), (1, Ho1))  # (1, 576)

    # ---- feature conv2 (64->1): fold channel/row contraction per time tap ----
    r_idx = jnp.arange(Ho1)[:, None]
    y2_idx = jnp.arange(Ho2)[None, :]
    i2 = r_idx - 2 * y2_idx + 1
    valid2 = (i2 >= 0) & (i2 < 3)
    i2c = jnp.clip(i2, 0, 2)
    v_list = []
    for j in range(3):
        w2j = c2w[0, :, :, j]                             # (64, 3) [c, i]
        vv = w2j.T[i2c]                                   # (Ho1, Ho2, 64)
        vv = jnp.where(valid2[:, :, None], vv, 0.0)
        v_list.append(jnp.transpose(vv, (0, 2, 1)).reshape(Ho1 * OC1, Ho2))
    p['feat_v'] = jnp.stack(v_list, 0)                    # (3, 576, 5)
    p['feat_b2'] = c2b.reshape(1, 1)

    # ---- image conv3d (3->64): fold height taps + channels, concat all (depth,width) taps ----
    kw3, kb3 = params['conv3d_w'], params['conv3d_b']     # (64,3,2,3,3), (64,)
    OC, C, KD, KH, KW = kw3.shape
    H = image_height
    Hp = H + 4
    Ho = (H + 4 - KH) // 2 + 1
    r = jnp.arange(Hp)[:, None]
    ho = jnp.arange(Ho)[None, :]
    ii = r - 2 * ho
    valid = (ii >= 0) & (ii < KH)
    iic = jnp.clip(ii, 0, KH - 1)
    ig_list = []
    for a in range(KD):
        for j in range(KW):
            waj = kw3[:, :, a, :, j]                      # (OC, C, KH)
            wt = jnp.transpose(waj, (2, 1, 0))            # (KH, C, OC)
            g = wt[iic]                                   # (Hp, Ho, C, OC)
            g = jnp.where(valid[:, :, None, None], g, 0.0)
            g = jnp.transpose(g, (2, 0, 1, 3))            # (C, Hp, Ho, OC)
            ig_list.append(g.reshape(C * Hp, Ho * OC))
    p['img_g'] = jnp.concatenate(ig_list, axis=0)         # (KD*KW*C*Hp, Ho*OC) = (216, 320)
    p['img_b'] = jnp.tile(kb3.reshape(1, OC), (1, Ho))    # (1, 320)
    return p


# ----------------------------------------------------------------------------
# Pure-JAX reference (correctness check against the raw, unfolded weights)
# ----------------------------------------------------------------------------
def reference_forward(precomp_feats, image, params):
    x = precomp_feats.T
    for (w, b) in params['fc']:
        x = jnp.maximum(x @ w + b, 0.0)
    ref4d = x.T.reshape(1, 1, x.shape[1], x.shape[0])
    c1 = lax.conv_general_dilated(ref4d, params['conv1_w'], (2, 1), [(1, 1), (1, 1)],
                                  dimension_numbers=('NCHW', 'OIHW', 'NCHW'))
    c1 = jnp.maximum(c1 + params['conv1_b'].reshape(1, -1, 1, 1), 0.0)
    c2 = lax.conv_general_dilated(c1, params['conv2_w'], (2, 1), [(1, 1), (1, 1)],
                                  dimension_numbers=('NCHW', 'OIHW', 'NCHW'))
    c2 = jnp.maximum(c2 + params['conv2_b'].reshape(1, -1, 1, 1), 0.0)
    c3 = lax.conv_general_dilated(image, params['conv3d_w'], (2, 2, 1),
                                  [(4, 4), (2, 2), (1, 1)],
                                  dimension_numbers=('NCDHW', 'OIDHW', 'NCDHW'))
    c3 = jnp.maximum(c3 + params['conv3d_b'].reshape(1, -1, 1, 1, 1), 0.0)
    return c2, c3


# ----------------------------------------------------------------------------
if __name__ == "__main__":
    key = jax.random.PRNGKey(0)
    k_feat, k_img, k_par = jax.random.split(key, 3)

    FEATURE_INPUT_SHAPE = 32   # feature_input_shape
    T = 8                      # sequence length (columns of precomputed_features)
    precomp_feats = jax.random.normal(k_feat, (FEATURE_INPUT_SHAPE, T), jnp.float32)
    image = jax.random.normal(k_img, (2, 3, 4, 8, 8), jnp.float32)   # NCDHW

    params = init_params(k_par, FEATURE_INPUT_SHAPE)
    prepared = prepare_params(params, image_height=image.shape[3])   # one-time weight folding

    feat_conv_out, image_conv_out = baseline_vanilla_forward(precomp_feats, image, prepared)
    feat_conv_out = jax.block_until_ready(feat_conv_out)
    image_conv_out = jax.block_until_ready(image_conv_out)

    # Shape checks (matching PyTorch semantics).
    assert feat_conv_out.shape == (1, 1, 5, T), feat_conv_out.shape
    assert image_conv_out.shape == (2, 64, 6, 5, 8), image_conv_out.shape

    # Numerical check vs. pure-JAX reference on the raw (unfolded) weights.
    ref_feat, ref_img = reference_forward(precomp_feats, image, params)
    assert jnp.allclose(feat_conv_out, ref_feat, rtol=2e-2, atol=2e-2), \
        float(jnp.max(jnp.abs(feat_conv_out - ref_feat)))
    assert jnp.allclose(image_conv_out, ref_img, rtol=2e-2, atol=2e-2), \
        float(jnp.max(jnp.abs(image_conv_out - ref_img)))

    print("KERNEL_OK")
</pallas_src>

<mosaic_0001>
module attributes {stable_mosaic.version = 11 : i64} {
  func.func @_fused_kernel(%arg0: i32, %arg1: memref<8x32xf32, #tpu.memory_space<vmem>>, %arg2: memref<32x72xf32, #tpu.memory_space<vmem>>, %arg3: memref<1x72xf32, #tpu.memory_space<vmem>>, %arg4: memref<72x36xf32, #tpu.memory_space<vmem>>, %arg5: memref<1x36xf32, #tpu.memory_space<vmem>>, %arg6: memref<36x18xf32, #tpu.memory_space<vmem>>, %arg7: memref<1x18xf32, #tpu.memory_space<vmem>>, %arg8: memref<54x576xf32, #tpu.memory_space<vmem>>, %arg9: memref<1x576xf32, #tpu.memory_space<vmem>>, %arg10: memref<3x576x5xf32, #tpu.memory_space<vmem>>, %arg11: memref<1x1xf32, #tpu.memory_space<vmem>>, %arg12: memref<1x48x216xf32, #tpu.memory_space<vmem>>, %arg13: memref<216x320xf32, #tpu.memory_space<vmem>>, %arg14: memref<1x320xf32, #tpu.memory_space<vmem>>, %arg15: memref<1x8x5xf32, #tpu.memory_space<vmem>>, %arg16: memref<1x48x320xf32, #tpu.memory_space<vmem>>, %arg17: memref<10x54xf32, #tpu.memory_space<vmem>>, %arg18: memref<10x576xf32, #tpu.memory_space<vmem>>) attributes {dimension_semantics = [#tpu.dimension_semantics<parallel>], iteration_bounds = array<i64: 2>, scalar_prefetch = 0 : i64, scratch_operands = 2 : i64, tpu.core_type = #tpu.core_type<tc>, window_params = [{pipeline_mode = #tpu.pipeline_mode<synchronous>, transform_indices = @transform_0, window_bounds = array<i64: 8, 32>}, {pipeline_mode = #tpu.pipeline_mode<synchronous>, transform_indices = @transform_1, window_bounds = array<i64: 32, 72>}, {pipeline_mode = #tpu.pipeline_mode<synchronous>, transform_indices = @transform_2, window_bounds = array<i64: 1, 72>}, {pipeline_mode = #tpu.pipeline_mode<synchronous>, transform_indices = @transform_3, window_bounds = array<i64: 72, 36>}, {pipeline_mode = #tpu.pipeline_mode<synchronous>, transform_indices = @transform_4, window_bounds = array<i64: 1, 36>}, {pipeline_mode = #tpu.pipeline_mode<synchronous>, transform_indices = @transform_5, window_bounds = array<i64: 36, 18>}, {pipeline_mode = #tpu.pipeline_mode<synchronous>, transform_indices = @transform_6, window_bounds = array<i64: 1, 18>}, {pipeline_mode = #tpu.pipeline_mode<synchronous>, transform_indices = @transform_7, window_bounds = array<i64: 54, 576>}, {pipeline_mode = #tpu.pipeline_mode<synchronous>, transform_indices = @transform_8, window_bounds = array<i64: 1, 576>}, {pipeline_mode = #tpu.pipeline_mode<synchronous>, transform_indices = @transform_9, window_bounds = array<i64: 3, 576, 5>}, {pipeline_mode = #tpu.pipeline_mode<synchronous>, transform_indices = @transform_10, window_bounds = array<i64: 1, 1>}, {transform_indices = @transform_11, window_bounds = array<i64: 1, 48, 216>}, {pipeline_mode = #tpu.pipeline_mode<synchronous>, transform_indices = @transform_12, window_bounds = array<i64: 216, 320>}, {pipeline_mode = #tpu.pipeline_mode<synchronous>, transform_indices = @transform_13, window_bounds = array<i64: 1, 320>}, {transform_indices = @transform_14, window_bounds = array<i64: 1, 8, 5>}, {transform_indices = @transform_15, window_bounds = array<i64: 1, 48, 320>}]} {
    %c0 = arith.constant 0 : index
    %c0_0 = arith.constant 0 : index
    %c0_1 = arith.constant 0 : index
    %0 = vector.load %arg12[%c0, %c0_0, %c0_1] : memref<1x48x216xf32, #tpu.memory_space<vmem>>, vector<1x48x216xf32>
    %1 = vector.shape_cast %0 : vector<1x48x216xf32> to vector<48x216xf32>
    %c0_2 = arith.constant 0 : index
    %c0_3 = arith.constant 0 : index
    %2 = vector.load %arg13[%c0_2, %c0_3] : memref<216x320xf32, #tpu.memory_space<vmem>>, vector<216x320xf32>
    %cst = arith.constant dense<0.000000e+00> : vector<48x320xf32>
    %3 = tpu.matmul %1, %2, %cst {dimension_numbers = #tpu.dot_dimension_numbers<[1], [0], [0], [1], [0, 0, 1, 1], [], []>} : vector<48x216xf32>, vector<216x320xf32>, vector<48x320xf32> -> vector<48x320xf32>
    %c0_4 = arith.constant 0 : index
    %c0_5 = arith.constant 0 : index
    %4 = vector.load %arg14[%c0_4, %c0_5] : memref<1x320xf32, #tpu.memory_space<vmem>>, vector<1x320xf32>
    %5 = vector.broadcast %4 : vector<1x320xf32> to vector<48x320xf32>
    %6 = arith.addf %3, %5 : vector<48x320xf32>
    %cst_6 = arith.constant 0.000000e+00 : f32
    %7 = vector.broadcast %cst_6 : f32 to vector<48x320xf32>
    %8 = arith.maximumf %6, %7 : vector<48x320xf32>
    %c0_7 = arith.constant 0 : index
    %c0_8 = arith.constant 0 : index
    %c0_9 = arith.constant 0 : index
    %9 = vector.load %arg16[%c0_7, %c0_8, %c0_9] : memref<1x48x320xf32, #tpu.memory_space<vmem>>, vector<1x48x320xf32>
    %10 = vector.shape_cast %9 : vector<1x48x320xf32> to vector<48x320xf32>
    %11 = vector.shape_cast %8 : vector<48x320xf32> to vector<1x48x320xf32>
    tpu.vector_store %arg16[%c0_7, %c0_8, %c0_9], %11 {strides = array<i32>} : memref<1x48x320xf32, #tpu.memory_space<vmem>>, vector<1x48x320xf32>,
    %c0_10 = arith.constant 0 : index
    %c0_11 = arith.constant 0 : index
    %12 = vector.load %arg1[%c0_10, %c0_11] : memref<8x32xf32, #tpu.memory_space<vmem>>, vector<8x32xf32>
    %c0_12 = arith.constant 0 : index
    %c0_13 = arith.constant 0 : index
    %13 = vector.load %arg2[%c0_12, %c0_13] : memref<32x72xf32, #tpu.memory_space<vmem>>, vector<32x72xf32>
    %cst_14 = arith.constant dense<0.000000e+00> : vector<8x72xf32>
    %14 = tpu.matmul %12, %13, %cst_14 {dimension_numbers = #tpu.dot_dimension_numbers<[1], [0], [0], [1], [0, 0, 1, 1], [], []>} : vector<8x32xf32>, vector<32x72xf32>, vector<8x72xf32> -> vector<8x72xf32>
    %c0_15 = arith.constant 0 : index
    %c0_16 = arith.constant 0 : index
    %15 = vector.load %arg3[%c0_15, %c0_16] : memref<1x72xf32, #tpu.memory_space<vmem>>, vector<1x72xf32>
    %16 = vector.broadcast %15 : vector<1x72xf32> to vector<8x72xf32>
    %17 = arith.addf %14, %16 : vector<8x72xf32>
    %cst_17 = arith.constant 0.000000e+00 : f32
    %18 = vector.broadcast %cst_17 : f32 to vector<8x72xf32>
    %19 = arith.maximumf %17, %18 : vector<8x72xf32>
    %c0_18 = arith.constant 0 : index
    %c0_19 = arith.constant 0 : index
    %20 = vector.load %arg4[%c0_18, %c0_19] : memref<72x36xf32, #tpu.memory_space<vmem>>, vector<72x36xf32>
    %cst_20 = arith.constant dense<0.000000e+00> : vector<8x36xf32>
    %21 = tpu.matmul %19, %20, %cst_20 {dimension_numbers = #tpu.dot_dimension_numbers<[1], [0], [0], [1], [0, 0, 1, 1], [], []>} : vector<8x72xf32>, vector<72x36xf32>, vector<8x36xf32> -> vector<8x36xf32>
    %c0_21 = arith.constant 0 : index
    %c0_22 = arith.constant 0 : index
    %22 = vector.load %arg5[%c0_21, %c0_22] : memref<1x36xf32, #tpu.memory_space<vmem>>, vector<1x36xf32>
    %23 = vector.broadcast %22 : vector<1x36xf32> to vector<8x36xf32>
    %24 = arith.addf %21, %23 : vector<8x36xf32>
    %cst_23 = arith.constant 0.000000e+00 : f32
    %25 = vector.broadcast %cst_23 : f32 to vector<8x36xf32>
    %26 = arith.maximumf %24, %25 : vector<8x36xf32>
    %c0_24 = arith.constant 0 : index
    %c0_25 = arith.constant 0 : index
    %27 = vector.load %arg6[%c0_24, %c0_25] : memref<36x18xf32, #tpu.memory_space<vmem>>, vector<36x18xf32>
    %cst_26 = arith.constant dense<0.000000e+00> : vector<8x18xf32>
    %28 = tpu.matmul %26, %27, %cst_26 {dimension_numbers = #tpu.dot_dimension_numbers<[1], [0], [0], [1], [0, 0, 1, 1], [], []>} : vector<8x36xf32>, vector<36x18xf32>, vector<8x18xf32> -> vector<8x18xf32>
    %c0_27 = arith.constant 0 : index
    %c0_28 = arith.constant 0 : index
    %29 = vector.load %arg7[%c0_27, %c0_28] : memref<1x18xf32, #tpu.memory_space<vmem>>, vector<1x18xf32>
    %30 = vector.broadcast %29 : vector<1x18xf32> to vector<8x18xf32>
    %31 = arith.addf %28, %30 : vector<8x18xf32>
    %cst_29 = arith.constant 0.000000e+00 : f32
    %32 = vector.broadcast %cst_29 : f32 to vector<8x18xf32>
    %33 = arith.maximumf %31, %32 : vector<8x18xf32>
    %cst_30 = arith.constant 0.000000e+00 : f32
    %34 = vector.broadcast %cst_30 : f32 to vector<10x54xf32>
    %c0_31 = arith.constant 0 : index
    %c0_32 = arith.constant 0 : index
    %35 = vector.load %arg17[%c0_31, %c0_32] : memref<10x54xf32, #tpu.memory_space<vmem>>, vector<10x54xf32>
    tpu.vector_store %arg17[%c0_31, %c0_32], %34 {strides = array<i32>} : memref<10x54xf32, #tpu.memory_space<vmem>>, vector<10x54xf32>,
    %c2 = arith.constant 2 : index
    %c0_33 = arith.constant 0 : index
    %36 = vector.load %arg17[%c2, %c0_33] : memref<10x54xf32, #tpu.memory_space<vmem>>, vector<8x18xf32>
    tpu.vector_store %arg17[%c2, %c0_33], %33 {strides = array<i32>} : memref<10x54xf32, #tpu.memory_space<vmem>>, vector<8x18xf32>,
    %c1 = arith.constant 1 : index
    %c18 = arith.constant 18 : index
    %37 = vector.load %arg17[%c1, %c18] : memref<10x54xf32, #tpu.memory_space<vmem>>, vector<8x18xf32>
    tpu.vector_store %arg17[%c1, %c18], %33 {strides = array<i32>} : memref<10x54xf32, #tpu.memory_space<vmem>>, vector<8x18xf32>,
    %c0_34 = arith.constant 0 : index
    %c36 = arith.constant 36 : index
    %38 = vector.load %arg17[%c0_34, %c36] : memref<10x54xf32, #tpu.memory_space<vmem>>, vector<8x18xf32>
    tpu.vector_store %arg17[%c0_34, %c36], %33 {strides = array<i32>} : memref<10x54xf32, #tpu.memory_space<vmem>>, vector<8x18xf32>,
    %c1_35 = arith.constant 1 : index
    %c0_36 = arith.constant 0 : index
    %39 = vector.load %arg17[%c1_35, %c0_36] : memref<10x54xf32, #tpu.memory_space<vmem>>, vector<8x54xf32>
    %c0_37 = arith.constant 0 : index
    %c0_38 = arith.constant 0 : index
    %40 = vector.load %arg8[%c0_37, %c0_38] : memref<54x576xf32, #tpu.memory_space<vmem>>, vector<54x576xf32>
    %cst_39 = arith.constant dense<0.000000e+00> : vector<8x576xf32>
    %41 = tpu.matmul %39, %40, %cst_39 {dimension_numbers = #tpu.dot_dimension_numbers<[1], [0], [0], [1], [0, 0, 1, 1], [], []>} : vector<8x54xf32>, vector<54x576xf32>, vector<8x576xf32> -> vector<8x576xf32>
    %c0_40 = arith.constant 0 : index
    %c0_41 = arith.constant 0 : index
    %42 = vector.load %arg9[%c0_40, %c0_41] : memref<1x576xf32, #tpu.memory_space<vmem>>, vector<1x576xf32>
    %43 = vector.broadcast %42 : vector<1x576xf32> to vector<8x576xf32>
    %44 = arith.addf %41, %43 : vector<8x576xf32>
    %cst_42 = arith.constant 0.000000e+00 : f32
    %45 = vector.broadcast %cst_42 : f32 to vector<8x576xf32>
    %46 = arith.maximumf %44, %45 : vector<8x576xf32>
    %cst_43 = arith.constant 0.000000e+00 : f32
    %47 = vector.broadcast %cst_43 : f32 to vector<10x576xf32>
    %c0_44 = arith.constant 0 : index
    %c0_45 = arith.constant 0 : index
    %48 = vector.load %arg18[%c0_44, %c0_45] : memref<10x576xf32, #tpu.memory_space<vmem>>, vector<10x576xf32>
    tpu.vector_store %arg18[%c0_44, %c0_45], %47 {strides = array<i32>} : memref<10x576xf32, #tpu.memory_space<vmem>>, vector<10x576xf32>,
    %c1_46 = arith.constant 1 : index
    %c0_47 = arith.constant 0 : index
    %49 = vector.load %arg18[%c1_46, %c0_47] : memref<10x576xf32, #tpu.memory_space<vmem>>, vector<8x576xf32>
    tpu.vector_store %arg18[%c1_46, %c0_47], %46 {strides = array<i32>} : memref<10x576xf32, #tpu.memory_space<vmem>>, vector<8x576xf32>,
    %c0_48 = arith.constant 0 : index
    %c0_49 = arith.constant 0 : index
    %50 = vector.load %arg18[%c0_48, %c0_49] : memref<10x576xf32, #tpu.memory_space<vmem>>, vector<8x576xf32>
    %c0_50 = arith.constant 0 : index
    %c0_51 = arith.constant 0 : index
    %c0_52 = arith.constant 0 : index
    %51 = vector.load %arg10[%c0_50, %c0_51, %c0_52] : memref<3x576x5xf32, #tpu.memory_space<vmem>>, vector<1x576x5xf32>
    %52 = vector.shape_cast %51 : vector<1x576x5xf32> to vector<576x5xf32>
    %cst_53 = arith.constant dense<0.000000e+00> : vector<8x5xf32>
    %53 = tpu.matmul %50, %52, %cst_53 {dimension_numbers = #tpu.dot_dimension_numbers<[1], [0], [0], [1], [0, 0, 1, 1], [], []>} : vector<8x576xf32>, vector<576x5xf32>, vector<8x5xf32> -> vector<8x5xf32>
    %c1_54 = arith.constant 1 : index
    %c0_55 = arith.constant 0 : index
    %c0_56 = arith.constant 0 : index
    %54 = vector.load %arg10[%c1_54, %c0_55, %c0_56] : memref<3x576x5xf32, #tpu.memory_space<vmem>>, vector<1x576x5xf32>
    %55 = vector.shape_cast %54 : vector<1x576x5xf32> to vector<576x5xf32>
    %cst_57 = arith.constant dense<0.000000e+00> : vector<8x5xf32>
    %56 = tpu.matmul %46, %55, %cst_57 {dimension_numbers = #tpu.dot_dimension_numbers<[1], [0], [0], [1], [0, 0, 1, 1], [], []>} : vector<8x576xf32>, vector<576x5xf32>, vector<8x5xf32> -> vector<8x5xf32>
    %57 = arith.addf %53, %56 : vector<8x5xf32>
    %c2_58 = arith.constant 2 : index
    %c0_59 = arith.constant 0 : index
    %58 = vector.load %arg18[%c2_58, %c0_59] : memref<10x576xf32, #tpu.memory_space<vmem>>, vector<8x576xf32>
    %c2_60 = arith.constant 2 : index
    %c0_61 = arith.constant 0 : index
    %c0_62 = arith.constant 0 : index
    %59 = vector.load %arg10[%c2_60, %c0_61, %c0_62] : memref<3x576x5xf32, #tpu.memory_space<vmem>>, vector<1x576x5xf32>
    %60 = vector.shape_cast %59 : vector<1x576x5xf32> to vector<576x5xf32>
    %cst_63 = arith.constant dense<0.000000e+00> : vector<8x5xf32>
    %61 = tpu.matmul %58, %60, %cst_63 {dimension_numbers = #tpu.dot_dimension_numbers<[1], [0], [0], [1], [0, 0, 1, 1], [], []>} : vector<8x576xf32>, vector<576x5xf32>, vector<8x5xf32> -> vector<8x5xf32>
    %62 = arith.addf %57, %61 : vector<8x5xf32>
    %c0_64 = arith.constant 0 : index
    %c0_65 = arith.constant 0 : index
    %63 = vector.load %arg11[%c0_64, %c0_65] : memref<1x1xf32, #tpu.memory_space<vmem>>, vector<1x1xf32>
    %64 = vector.broadcast %63 : vector<1x1xf32> to vector<8x5xf32>
    %65 = arith.addf %62, %64 : vector<8x5xf32>
    %cst_66 = arith.constant 0.000000e+00 : f32
    %66 = vector.broadcast %cst_66 : f32 to vector<8x5xf32>
    %67 = arith.maximumf %65, %66 : vector<8x5xf32>
    %c0_67 = arith.constant 0 : index
    %c0_68 = arith.constant 0 : index
    %c0_69 = arith.constant 0 : index
    %68 = vector.load %arg15[%c0_67, %c0_68, %c0_69] : memref<1x8x5xf32, #tpu.memory_space<vmem>>, vector<1x8x5xf32>
    %69 = vector.shape_cast %68 : vector<1x8x5xf32> to vector<8x5xf32>
    %70 = vector.shape_cast %67 : vector<8x5xf32> to vector<1x8x5xf32>
    tpu.vector_store %arg15[%c0_67, %c0_68, %c0_69], %70 {strides = array<i32>} : memref<1x8x5xf32, #tpu.memory_space<vmem>>, vector<1x8x5xf32>,
    return
  }
  func.func @transform_0(%arg0: i32) -> (i32, i32) {
    %c0_i32 = arith.constant 0 : i32
    %c0_i32_0 = arith.constant 0 : i32
    %c0_i32_1 = arith.constant 0 : i32
    return %c0_i32, %c0_i32_0 : i32, i32
  }
  func.func @transform_1(%arg0: i32) -> (i32, i32) {
    %c0_i32 = arith.constant 0 : i32
    %c0_i32_0 = arith.constant 0 : i32
    %c0_i32_1 = arith.constant 0 : i32
    return %c0_i32, %c0_i32_0 : i32, i32
  }
  func.func @transform_2(%arg0: i32) -> (i32, i32) {
    %c0_i32 = arith.constant 0 : i32
    %c0_i32_0 = arith.constant 0 : i32
    %c0_i32_1 = arith.constant 0 : i32
    return %c0_i32, %c0_i32_0 : i32, i32
  }
  func.func @transform_3(%arg0: i32) -> (i32, i32) {
    %c0_i32 = arith.constant 0 : i32
    %c0_i32_0 = arith.constant 0 : i32
    %c0_i32_1 = arith.constant 0 : i32
    return %c0_i32, %c0_i32_0 : i32, i32
  }
  func.func @transform_4(%arg0: i32) -> (i32, i32) {
    %c0_i32 = arith.constant 0 : i32
    %c0_i32_0 = arith.constant 0 : i32
    %c0_i32_1 = arith.constant 0 : i32
    return %c0_i32, %c0_i32_0 : i32, i32
  }
  func.func @transform_5(%arg0: i32) -> (i32, i32) {
    %c0_i32 = arith.constant 0 : i32
    %c0_i32_0 = arith.constant 0 : i32
    %c0_i32_1 = arith.constant 0 : i32
    return %c0_i32, %c0_i32_0 : i32, i32
  }
  func.func @transform_6(%arg0: i32) -> (i32, i32) {
    %c0_i32 = arith.constant 0 : i32
    %c0_i32_0 = arith.constant 0 : i32
    %c0_i32_1 = arith.constant 0 : i32
    return %c0_i32, %c0_i32_0 : i32, i32
  }
  func.func @transform_7(%arg0: i32) -> (i32, i32) {
    %c0_i32 = arith.constant 0 : i32
    %c0_i32_0 = arith.constant 0 : i32
    %c0_i32_1 = arith.constant 0 : i32
    return %c0_i32, %c0_i32_0 : i32, i32
  }
  func.func @transform_8(%arg0: i32) -> (i32, i32) {
    %c0_i32 = arith.constant 0 : i32
    %c0_i32_0 = arith.constant 0 : i32
    %c0_i32_1 = arith.constant 0 : i32
    return %c0_i32, %c0_i32_0 : i32, i32
  }
  func.func @transform_9(%arg0: i32) -> (i32, i32, i32) {
    %c0_i32 = arith.constant 0 : i32
    %c0_i32_0 = arith.constant 0 : i32
    %c0_i32_1 = arith.constant 0 : i32
    %c0_i32_2 = arith.constant 0 : i32
    return %c0_i32, %c0_i32_0, %c0_i32_1 : i32, i32, i32
  }
  func.func @transform_10(%arg0: i32) -> (i32, i32) {
    %c0_i32 = arith.constant 0 : i32
    %c0_i32_0 = arith.constant 0 : i32
    %c0_i32_1 = arith.constant 0 : i32
    return %c0_i32, %c0_i32_0 : i32, i32
  }
  func.func @transform_11(%arg0: i32) -> (i32, i32, i32) {
    %c0_i32 = arith.constant 0 : i32
    %c0_i32_0 = arith.constant 0 : i32
    %c0_i32_1 = arith.constant 0 : i32
    return %arg0, %c0_i32, %c0_i32_0 : i32, i32, i32
  }
  func.func @transform_12(%arg0: i32) -> (i32, i32) {
    %c0_i32 = arith.constant 0 : i32
    %c0_i32_0 = arith.constant 0 : i32
    %c0_i32_1 = arith.constant 0 : i32
    return %c0_i32, %c0_i32_0 : i32, i32
  }
  func.func @transform_13(%arg0: i32) -> (i32, i32) {
    %c0_i32 = arith.constant 0 : i32
    %c0_i32_0 = arith.constant 0 : i32
    %c0_i32_1 = arith.constant 0 : i32
    return %c0_i32, %c0_i32_0 : i32, i32
  }
  func.func @transform_14(%arg0: i32) -> (i32, i32, i32) {
    %c0_i32 = arith.constant 0 : i32
    %c0_i32_0 = arith.constant 0 : i32
    %c0_i32_1 = arith.constant 0 : i32
    return %arg0, %c0_i32, %c0_i32_0 : i32, i32, i32
  }
  func.func @transform_15(%arg0: i32) -> (i32, i32, i32) {
    %c0_i32 = arith.constant 0 : i32
    %c0_i32_0 = arith.constant 0 : i32
    %c0_i32_1 = arith.constant 0 : i32
    return %arg0, %c0_i32, %c0_i32_0 : i32, i32, i32
  }
}

</mosaic_0001>

<bundles_post_ra>
// kernel: baseline_vanilla_forward_impl.1
= control target key start
LH: loop header
LB: loop body
LE: loop exit
PB: predicated region body
PF: predicated region fallthrough
CT: control target
= control target key end

     0   :  { %s3555_s20 = smov 0   ;;  %s4824_s0 = inlined_call_operand.vmem [shape: f32[8,32], index: 0, kind: input, shape index: {}]   ;;  %s4825_s1 = inlined_call_operand.vmem [shape: f32[32,72], index: 1, kind: input, shape index: {}]   ;;  %s4826_s2 = inlined_call_operand.vmem [shape: f32[1,72], index: 2, kind: input, shape index: {}]   ;;  %s4827_s3 = inlined_call_operand.vmem [shape: f32[72,36], index: 3, kind: input, shape index: {}]   ;;  %s4828_s4 = inlined_call_operand.vmem [shape: f32[1,36], index: 4, kind: input, shape index: {}]   ;;  %s4829_s5 = inlined_call_operand.vmem [shape: f32[36,18], index: 5, kind: input, shape index: {}]   ;;  %s4830_s6 = inlined_call_operand.vmem [shape: f32[1,18], index: 6, kind: input, shape index: {}]   ;;  %s4831_s7 = inlined_call_operand.vmem [shape: f32[54,576], index: 7, kind: input, shape index: {}]   ;;  %s4832_s8 = inlined_call_operand.vmem [shape: f32[1,576], index: 8, kind: input, shape index: {}]   ;;  %s4833_s9 = inlined_call_operand.vmem [shape: f32[3,576,5], index: 9, kind: input, shape index: {}]   ;;  %s4834_s10 = inlined_call_operand.<no memory space> [shape: f32[1,1], index: 10, kind: input, shape index: {}]   ;;  %s4835_s11 = inlined_call_operand.vmem [shape: f32[2,48,216], index: 11, kind: input, shape index: {}]   ;;  %s4836_s12 = inlined_call_operand.vmem [shape: f32[216,320], index: 12, kind: input, shape index: {}]   ;;  %s4837_s13 = inlined_call_operand.vmem [shape: f32[1,320], index: 13, kind: input, shape index: {}]   ;;  %s4838_s14 = inlined_call_operand.vmem [shape: f32[2,8,5], index: 14, kind: output, shape index: {0}]   ;;  %s4839_s15 = inlined_call_operand.vmem [shape: f32[2,48,320], index: 15, kind: output, shape index: {1}]  }
   0x1   :  { %v21_v0 = vstv %s4834_s10 }
   0x2   :  { %22 = vst [vmem:[#allocation4] sm:$0x1] %v21_v0 }
   0x3 LB: > { %s2493_s21 = sadd.s32 4294967295, %s3464_s20   ;;  %p2497_p0 = scmp.ge.s32.totalorder %s3464_s20, 1  ;;  %s3464_s20 = sphi %s3555_s20, %s28_s20  }
   0x4   : > { %p442_p1 = scmp.lt.s32.totalorder %s3464_s20, 3 }
   0x6   : > { %p443_p2 = pnand %p2497_p0, %p442_p1 }
   0x7   : > { %v521_v1 = vld [vmem:[%s4836_s12 + $0x8] sm:$0xff] (!%p443_p2)  ;;  %v524_v2 = vld [vmem:[%s4836_s12 + $0x20] sm:$0xff] (!%p443_p2)  ;;  %v523_v5 = vld [vmem:[%s4836_s12 + $0x18] sm:$0xff] (!%p443_p2)  ;;  %v3466_v8 = vmov (!%p443_p2), 0.0|0.0   ;;  %v3467_v14 = vmov (!%p443_p2), 0.0   ;;  %p494_p3 = scmp.lt.s32.totalorder (!%p443_p2), %s2493_s21, 1 }
   0x8   : > { %446 = sbr.rel (%p443_p2) target bundleno = 1398 (0x576), region = 76  ;;  %v520_v3 = vld [vmem:[%s4836_s12] sm:$0xff] (!%p443_p2)  ;;  %v3063_v4 = vpack.c.bf16 (!%p443_p2), %v524_v2, %v521_v1  ;;  %v527_v6 = vld [vmem:[%s4836_s12 + $0x38] sm:$0xff] (!%p443_p2)  ;;  %v530_v7 = vld [vmem:[%s4836_s12 + $0x50] sm:$0xff] (!%p443_p2)  ;;  %3115 = vmatprep.subr.bf16.mxu1 (!%p443_p2), %v3466_v8  ;;  %1455 = vst [vmem:[#allocation3] sm:$0xff] (!%p443_p2), %v3467_v14  ;;  %vm618_vm0 = vcmask (!%p443_p2), 719872  }
   0x9   : > { %v3065_v9 = vpack.c.bf16 (!%p443_p2), %v523_v5, %v520_v3  ;;  %v3067_v10 = vpack.c.bf16 (!%p443_p2), %v530_v7, %v527_v6  ;;  %v526_v11 = vld [vmem:[%s4836_s12 + $0x30] sm:$0xff] (!%p443_p2)  ;;  %v529_v12 = vld [vmem:[%s4836_s12 + $0x48] sm:$0xff] (!%p443_p2)  ;;  %1456 = vst [vmem:[#allocation3 + $0x8] sm:$0xff] (!%p443_p2), %v3467_v14  ;;  %1457 = vst [vmem:[#allocation3 + $0x10] sm:$0xff] (!%p443_p2), %v3467_v14  ;;  %vm3468_vm1 = vmmov (!%p443_p2), 0   ;;  %vm882_vm2 = vcmask (!%p443_p2), 261120  }
   0xa   : > { %v533_v13 = vld [vmem:[%s4836_s12 + $0x68] sm:$0xff] (!%p443_p2)  ;;  %1458 = vst [vmem:[#allocation3 + $0x18] sm:$0xff] (!%p443_p2), %v3467_v14  ;;  %1460 = vst [vmem:[#allocation3 + $0x28] sm:$0x3] (!%p443_p2), %v3467_v14  ;;  %3064 = vmatprep.subr.bf16.mxu0 (!%p443_p2), %v3063_v4  ;;  %v536_v15 = vld [vmem:[%s4836_s12 + $0x80] sm:$0xff] (!%p443_p2)  ;;  %v3069_v16 = vpack.c.bf16 (!%p443_p2), %v529_v12, %v526_v11  ;;  %vm853_vm3 = vcmask (!%p443_p2), 523264  }
   0xb   : > { %1461 = vst [vmem:[#allocation3 + $0x30] sm:$0x3] (!%p443_p2), %v3467_v14  ;;  %1462 = vst [vmem:[#allocation3 + $0x38] sm:$0x3] (!%p443_p2), %v3467_v14  ;;  %3066 = vmatpush1.bf16.msra.mxu0 (!%p443_p2), %v3065_v9  ;;  %v3071_v17 = vpack.c.bf16 (!%p443_p2), %v536_v15, %v533_v13  ;;  %v532_v18 = vld [vmem:[%s4836_s12 + $0x60] sm:$0xff] (!%p443_p2)  ;;  %v535_v19 = vld [vmem:[%s4836_s12 + $0x78] sm:$0xff] (!%p443_p2) }
   0xc   : > { %1463 = vst [vmem:[#allocation3 + $0x40] sm:$0x3] (!%p443_p2), %v3467_v14  ;;  %3068 = vmatprep.subr.bf16.mxu0 (!%p443_p2), %v3067_v10  ;;  %v539_v20 = vld [vmem:[%s4836_s12 + $0x98] sm:$0xff] (!%p443_p2)  ;;  %v542_v21 = vld [vmem:[%s4836_s12 + $0xb0] sm:$0xff] (!%p443_p2)  ;;  %v3073_v22 = vpack.c.bf16 (!%p443_p2), %v535_v19, %v532_v18  ;;  %v541_v25 = vld [vmem:[%s4836_s12 + $0xa8] sm:$0xff] (!%p443_p2)  ;;  %vm973_vm4 = vcmask (!%p443_p2), 588800  }
   0xd   : > { %v3075_v23 = vpack.c.bf16 (!%p443_p2), %v542_v21, %v539_v20  ;;  %v538_v24 = vld [vmem:[%s4836_s12 + $0x90] sm:$0xff] (!%p443_p2)  ;;  %v545_v26 = vld [vmem:[%s4836_s12 + $0xc8] sm:$0xff] (!%p443_p2)  ;;  %v548_v27 = vld [vmem:[%s4836_s12 + $0xe0] sm:$0xff] (!%p443_p2)  ;;  %1459 = vst.msk [vmem:[#allocation3 + $0x20] sm:$0xff] (!%p443_p2), %vm853_vm3, %v3467_v14  ;;  %vm1064_vm5 = vcmask (!%p443_p2), 1043456   ;;  %vm1060_vm6 = vcmask (!%p443_p2), 293888  }
   0xe   : > { %v3077_v28 = vpack.c.bf16 (!%p443_p2), %v541_v25, %v538_v24  ;;  %v3079_v29 = vpack.c.bf16 (!%p443_p2), %v548_v27, %v545_v26  ;;  %v544_v30 = vld [vmem:[%s4836_s12 + $0xc0] sm:$0xff] (!%p443_p2)  ;;  %v547_v31 = vld [vmem:[%s4836_s12 + $0xd8] sm:$0xff] (!%p443_p2)  ;;  %v554_v33 = vld [vmem:[%s4836_s12 + $0x110] sm:$0xff] (!%p443_p2)  ;;  %vm1139_vm7 = vcmask (!%p443_p2), 441344   ;;  %vm1141_vm8 = vcmask (!%p443_p2), 435200   ;;  %s3470_s23 = smov (!%p443_p2), 36  }
   0xf   : > { %s4841_s21 = smov (!%p494_p3, %s2493_s21), 1  ;;  %3070 = vmatpush1.bf16.msra.mxu0 %v3069_v16  ;;  %v551_v32 = vld [vmem:[%s4836_s12 + $0xf8] sm:$0xff]  ;;  %v3081_v34 = vpack.c.bf16 %v547_v31, %v544_v30  ;;  %v550_v36 = vld [vmem:[%s4836_s12 + $0xf0] sm:$0xff]  ;;  %v553_v37 = vld [vmem:[%s4836_s12 + $0x108] sm:$0xff]  ;;  %1140 = vst.msk [vmem:[#allocation2] sm:$0xff] %vm1139_vm7, %v3467_v14  ;;  %vm1222_vm9 = vcmask 1045504  }
  0x10   : > { %3072 = vmatprep.subr.bf16.mxu0 %v3071_v17  ;;  %s3439_s29 = smul.u32 96, %s4841_s21  ;;  %v3083_v35 = vpack.c.bf16 %v554_v33, %v551_v32  ;;  %v557_v38 = vld [vmem:[%s4836_s12 + $0x128] sm:$0xff]  ;;  %v560_v39 = vld [vmem:[%s4836_s12 + $0x140] sm:$0xff]  ;;  %v3085_v41 = vpack.c.bf16 %v553_v37, %v550_v36  ;;  %v559_v44 = vld [vmem:[%s4836_s12 + $0x138] sm:$0xff]  ;;  %1142 = vst.msk [vmem:[#allocation2 + $0x8] sm:$0x3] %vm1141_vm8, %v3467_v14 }
  0x11   : > { %v3087_v42 = vpack.c.bf16 %v560_v39, %v557_v38  ;;  %v556_v43 = vld [vmem:[%s4836_s12 + $0x120] sm:$0xff]  ;;  %v563_v45 = vld [vmem:[%s4836_s12 + $0x158] sm:$0xff]  ;;  %v566_v46 = vld [vmem:[%s4836_s12 + $0x170] sm:$0xff]  ;;  %s3440_s16 = smul.u32 144, %s4841_s21  ;;  %vm1143_vm10 = vcmask 146432   ;;  %vm1149_vm11 = vcmask 294032  }
  0x12   : > { %s3648_s26 = scalar_lea.vmem %s4835_s11, %s3439_s29  ;;  %v522_v47 = vld [vmem:[%s4836_s12 + $0x10] sm:$0xff]  ;;  %v3089_v48 = vpack.c.bf16 %v559_v44, %v556_v43  ;;  %v525_v49 = vld [vmem:[%s4836_s12 + $0x28] sm:$0xff]  ;;  %v528_v50 = vld [vmem:[%s4836_s12 + $0x40] sm:$0xff]  ;;  %v3091_v52 = vpack.c.bf16 %v566_v46, %v563_v45  ;;  %vm1154_vm12 = vcmask 441632   ;;  %vm1464_vm13 = vcmask 517120   ;;  %s2499_s10 = sshll.u32 %s4841_s21, 3 }
  0x13   : > { %3074 = vmatpush1.bf16.msra.mxu0 %v3073_v22  ;;  %v509_v40 = vld [vmem:[%s3648_s26 + $0x8] sm:$0xff]  ;;  %v531_v51 = vld [vmem:[%s4836_s12 + $0x58] sm:$0xff]  ;;  %v562_v53 = vld [vmem:[%s4836_s12 + $0x150] sm:$0xff]  ;;  %v3116_v55 = vpack.c.bf16 %v525_v49, %v522_v47  ;;  %s3948_s29 = scalar_lea.vmem %s4839_s15, %s3440_s16  ;;  %vm1485_vm14 = vcmask 523265   ;;  %vm1491_vm15 = vcmask 516096   ;;  %s502_s27 = scalar_lea.vmem %s4838_s14, %s2499_s10 }
  0x14   : > { %3076 = vmatprep.subr.bf16.mxu0 %v3075_v23  ;;  %2501 = vmatprep.mubr.msk.f32.mxu0 %vm618_vm0, %v509_v40  ;;  %v565_v54 = vld [vmem:[%s4836_s12 + $0x168] sm:$0xff]  ;;  %v572_v57 = vld [vmem:[%s4836_s12 + $0x1a0] sm:$0xff]  ;;  %v3119_v58 = vpack.c.bf16 %v531_v51, %v528_v50  ;;  %v534_v60 = vld [vmem:[%s4836_s12 + $0x70] sm:$0xff] }
  0x15   : > { %2507 = vmatprep.mubr.msk.f32.mxu1 %vm618_vm0, %v509_v40  ;;  %v569_v56 = vld [vmem:[%s4836_s12 + $0x188] sm:$0xff]  ;;  %3117 = vmatpush1.bf16.msra.mxu1 %v3116_v55  ;;  %v3093_v59 = vpack.c.bf16 %v565_v54, %v562_v53  ;;  %v568_v63 = vld [vmem:[%s4836_s12 + $0x180] sm:$0xff]  ;;  %v571_v0 = vld [vmem:[%s4836_s12 + $0x198] sm:$0xff] }
  0x16   : > { %3118 = vmatprep.subr.bf16.mxu1 %v3466_v8  ;;  %v537_v61 = vld [vmem:[%s4836_s12 + $0x88] sm:$0xff]  ;;  %v3095_v62 = vpack.c.bf16 %v572_v57, %v569_v56  ;;  %v575_v1 = vld [vmem:[%s4836_s12 + $0x1b8] sm:$0xff]  ;;  %v578_v2 = vld [vmem:[%s4836_s12 + $0x1d0] sm:$0xff]  ;;  %v3097_v4 = vpack.c.bf16 %v571_v0, %v568_v63 }
  0x17   : > { %3078 = vmatpush1.bf16.msra.mxu0 %v3077_v28  ;;  %v3122_v3 = vpack.c.bf16 %v537_v61, %v534_v60  ;;  %v540_v5 = vld [vmem:[%s4836_s12 + $0xa0] sm:$0xff]  ;;  %v543_v6 = vld [vmem:[%s4836_s12 + $0xb8] sm:$0xff]  ;;  %v3099_v7 = vpack.c.bf16 %v578_v2, %v575_v1  ;;  %v574_v9 = vld [vmem:[%s4836_s12 + $0x1b0] sm:$0xff] }
  0x18   : > { %3080 = vmatprep.subr.bf16.mxu0 %v3079_v29  ;;  %v577_v10 = vld [vmem:[%s4836_s12 + $0x1c8] sm:$0xff]  ;;  %v584_v12 = vld [vmem:[%s4836_s12 + $0x200] sm:$0xff]  ;;  %v3125_v13 = vpack.c.bf16 %v543_v6, %v540_v5  ;;  %v546_v16 = vld [vmem:[%s4836_s12 + $0xd0] sm:$0xff] }
  0x19   : > { %3120 = vmatpush1.bf16.msra.mxu1 %v3119_v58  ;;  %v581_v11 = vld [vmem:[%s4836_s12 + $0x1e8] sm:$0xff]  ;;  %v3101_v15 = vpack.c.bf16 %v577_v10, %v574_v9  ;;  %v580_v19 = vld [vmem:[%s4836_s12 + $0x1e0] sm:$0xff]  ;;  %v583_v20 = vld [vmem:[%s4836_s12 + $0x1f8] sm:$0xff] }
  0x1a   : > { %3121 = vmatprep.subr.bf16.mxu1 %v3466_v8  ;;  %v549_v17 = vld [vmem:[%s4836_s12 + $0xe8] sm:$0xff]  ;;  %v3103_v18 = vpack.c.bf16 %v584_v12, %v581_v11  ;;  %v587_v21 = vld [vmem:[%s4836_s12 + $0x218] sm:$0xff]  ;;  %v590_v22 = vld [vmem:[%s4836_s12 + $0x230] sm:$0xff]  ;;  %v3105_v24 = vpack.c.bf16 %v583_v20, %v580_v19 }
  0x1b   : > { %3082 = vmatpush1.bf16.msra.mxu0 %v3081_v34  ;;  %v3128_v23 = vpack.c.bf16 %v549_v17, %v546_v16  ;;  %v552_v25 = vld [vmem:[%s4836_s12 + $0x100] sm:$0xff]  ;;  %v555_v26 = vld [vmem:[%s4836_s12 + $0x118] sm:$0xff]  ;;  %v3107_v27 = vpack.c.bf16 %v590_v22, %v587_v21  ;;  %v586_v28 = vld [vmem:[%s4836_s12 + $0x210] sm:$0xff] }
  0x1c   : > { %3084 = vmatprep.subr.bf16.mxu0 %v3083_v35  ;;  %v589_v29 = vld [vmem:[%s4836_s12 + $0x228] sm:$0xff]  ;;  %v596_v31 = vld [vmem:[%s4836_s12 + $0x260] sm:$0xff]  ;;  %v3131_v32 = vpack.c.bf16 %v555_v26, %v552_v25  ;;  %v558_v34 = vld [vmem:[%s4836_s12 + $0x130] sm:$0xff] }
  0x1d   : > { %3123 = vmatpush1.bf16.msra.mxu1 %v3122_v3  ;;  %v593_v30 = vld [vmem:[%s4836_s12 + $0x248] sm:$0xff]  ;;  %v3109_v33 = vpack.c.bf16 %v589_v29, %v586_v28  ;;  %v592_v37 = vld [vmem:[%s4836_s12 + $0x240] sm:$0xff]  ;;  %v595_v38 = vld [vmem:[%s4836_s12 + $0x258] sm:$0xff] }
  0x1e   : > { %3124 = vmatprep.subr.bf16.mxu1 %v3466_v8  ;;  %v561_v35 = vld [vmem:[%s4836_s12 + $0x148] sm:$0xff]  ;;  %v3111_v36 = vpack.c.bf16 %v596_v31, %v593_v30  ;;  %v3113_v40 = vpack.c.bf16 %v595_v38, %v592_v37  ;;  %v599_v43 = vld [vmem:[%s4836_s12 + $0x278] sm:$0xff]  ;;  %v871_v44 = vld [vmem:[%s4825_s1] sm:$0xff]  ;;  %v603_v31 = vlaneseq }
  0x1f   : > { %3086 = vmatpush1.bf16.msra.mxu0 %v3085_v41  ;;  %v3134_v39 = vpack.c.bf16 %v561_v35, %v558_v34  ;;  %v564_v41 = vld [vmem:[%s4836_s12 + $0x160] sm:$0xff]  ;;  %v872_v45 = vld [vmem:[%s4825_s1 + $0x8] sm:$0xff]  ;;  %v570_v47 = vld [vmem:[%s4836_s12 + $0x190] sm:$0xff] }
  0x20   : > { %3088 = vmatprep.subr.bf16.mxu0 %v3087_v42  ;;  %v567_v42 = vld [vmem:[%s4836_s12 + $0x178] sm:$0xff]  ;;  %v598_v49 = vld [vmem:[%s4836_s12 + $0x270] sm:$0xff]  ;;  %v3817_v50 = vld [vmem:[%s3648_s26] sm:$0xff]  ;;  %v3155_v51 = vpack.c.bf16 %v872_v45, %v871_v44 }
  0x21   : > { %3126 = vmatpush1.bf16.msra.mxu1 %v3125_v13  ;;  %v3137_v46 = vpack.c.bf16 %v567_v42, %v564_v41  ;;  %v873_v53 = vld [vmem:[%s4825_s1 + $0x10] sm:$0xff]  ;;  %v874_v54 = vld [vmem:[%s4825_s1 + $0x18] sm:$0xff]  ;;  %v576_v56 = vld [vmem:[%s4836_s12 + $0x1c0] sm:$0xff] }
  0x22   : > { %3127 = vmatprep.subr.bf16.mxu1 %v3466_v8  ;;  %v579_v57 = vld [vmem:[%s4836_s12 + $0x1d8] sm:$0xff]  ;;  %v510_v58 = vld [vmem:[%s3648_s26 + $0x10] sm:$0xff]  ;;  %v513_v60 = vld [vmem:[%s3648_s26 + $0x28] sm:$0xff] }
  0x23   : > { %3090 = vmatpush1.bf16.msra.mxu0 %v3089_v48  ;;  %v573_v48 = vld [vmem:[%s4836_s12 + $0x1a8] sm:$0xff]  ;;  %v3143_v61 = vpack.c.bf16 %v579_v57, %v576_v56  ;;  %v512_v0 = vld [vmem:[%s3648_s26 + $0x20] sm:$0xff]  ;;  %v515_v1 = vld [vmem:[%s3648_s26 + $0x38] sm:$0xff] }
  0x24   : > { %3092 = vmatprep.subr.bf16.mxu0 %v3091_v52  ;;  %v3820_v52 = vld [vmem:[%s3648_s26 + $0x18] sm:$0xff]  ;;  %v3140_v55 = vpack.c.bf16 %v573_v48, %v570_v47  ;;  %v585_v63 = vld [vmem:[%s4836_s12 + $0x208] sm:$0xff]  ;;  %v588_v3 = vld [vmem:[%s4836_s12 + $0x220] sm:$0xff] }
  0x25   : > { %3129 = vmatpush1.bf16.msra.mxu1 %v3128_v23  ;;  %v514_v5 = vld [vmem:[%s3648_s26 + $0x30] sm:$0xff]  ;;  %v517_v6 = vld [vmem:[%s3648_s26 + $0x48] sm:$0xff]  ;;  %v516_v9 = vld [vmem:[%s3648_s26 + $0x40] sm:$0xff] }
  0x26   : > { %3130 = vmatprep.subr.bf16.mxu1 %v3466_v8  ;;  %v519_v10 = vld [vmem:[%s3648_s26 + $0x58] sm:$0xff]  ;;  %v518_v11 = vld [vmem:[%s3648_s26 + $0x50] sm:$0xff]  ;;  %v870_v12 = vld [vmem:[%s4824_s0] sm:$0xff]  ;;  %s3469_s26 = smov 18  }
  0x27   : > { %3094 = vmatpush1.bf16.msra.mxu0 %v3093_v59  ;;  %v3158_v59 = vpack.c.bf16 %v874_v54, %v873_v53  ;;  %v594_v13 = vld [vmem:[%s4836_s12 + $0x250] sm:$0xff]  ;;  %v600_v17 = vld [vmem:[%s4836_s12 + $0x280] sm:$0xff]  ;;  %v958_v19 = vld [vmem:[%s4827_s3 + $0x8] sm:$0xff] }
  0x28   : > { %3096 = vmatprep.subr.bf16.mxu0 %v3095_v62  ;;  %v582_v62 = vld [vmem:[%s4836_s12 + $0x1f0] sm:$0xff]  ;;  %v960_v22 = vld [vmem:[%s4827_s3 + $0x18] sm:$0xff]  ;;  %v962_v25 = vld [vmem:[%s4827_s3 + $0x28] sm:$0xff] }
  0x29   : > { %3132 = vmatpush1.bf16.msra.mxu1 %v3131_v32  ;;  %v3146_v2 = vpack.c.bf16 %v585_v63, %v582_v62  ;;  %v959_v21 = vld [vmem:[%s4827_s3 + $0x10] sm:$0xff]  ;;  %v964_v28 = vld [vmem:[%s4827_s3 + $0x38] sm:$0xff]  ;;  %v965_v30 = vld [vmem:[%s4827_s3 + $0x40] sm:$0xff]  ;;  %v3929_v32 = vshrl.u32 %v603_v31, 7 }
  0x2a   : > { %3133 = vmatprep.subr.bf16.mxu1 %v3466_v8  ;;  %v3164_v23 = vpack.c.bf16 %v960_v22, %v959_v21  ;;  %v3935_v34 = vld [vmem:[%s4837_s13] sm:$0x7] }
  0x2b   : > { %3098 = vmatpush1.bf16.msra.mxu0 %v3097_v4  ;;  %v591_v4 = vld [vmem:[%s4836_s12 + $0x238] sm:$0xff]  ;;  %v609_v35 = vsub.s32 1, %v3929_v32 }
  0x2c   : > { %3100 = vmatprep.subr.bf16.mxu0 %v3099_v7  ;;  %v3149_v7 = vpack.c.bf16 %v591_v4, %v588_v3 }
  0x2d   : > { %3135 = vmatpush1.bf16.msra.mxu1 %v3134_v39  ;;  %v610_v37 = vrot.slane %v3935_v34, %v609_v35 }
  0x2e   : > { %3136 = vmatprep.subr.bf16.mxu1 %v3466_v8 }
  0x2f   : > { %3102 = vmatpush1.bf16.msra.mxu0 %v3101_v15  ;;  %v597_v15 = vld [vmem:[%s4836_s12 + $0x268] sm:$0xff] }
  0x30   : > { %3104 = vmatprep.subr.bf16.mxu0 %v3103_v18  ;;  %v3152_v16 = vpack.c.bf16 %v597_v15, %v594_v13  ;;  %v957_v18 = vld [vmem:[%s4827_s3] sm:$0xff] }
  0x31   : > { %3138 = vmatpush1.bf16.msra.mxu1 %v3137_v46  ;;  %v3161_v20 = vpack.c.bf16 %v958_v19, %v957_v18 }
  0x32   : > { %3139 = vmatprep.subr.bf16.mxu1 %v3466_v8 }
  0x33   : > { %3106 = vmatpush1.bf16.msra.mxu0 %v3105_v24  ;;  %v961_v24 = vld [vmem:[%s4827_s3 + $0x20] sm:$0xff] }
  0x34   : > { %3108 = vmatprep.subr.bf16.mxu0 %v3107_v27  ;;  %v3167_v26 = vpack.c.bf16 %v962_v25, %v961_v24  ;;  %v963_v27 = vld [vmem:[%s4827_s3 + $0x30] sm:$0xff] }
  0x35   : > { %3141 = vmatpush1.bf16.msra.mxu1 %v3140_v55  ;;  %v3170_v29 = vpack.c.bf16 %v964_v28, %v963_v27 }
  0x36   : > { %3142 = vmatprep.subr.bf16.mxu1 %v3466_v8 }
  0x37   : > { %3110 = vmatpush1.bf16.msra.mxu0 %v3109_v33  ;;  %v605_v33 = vsub.s32 0, %v3929_v32 }
  0x38   : > { %3112 = vmatprep.subr.bf16.mxu0 %v3111_v36 }
  0x39   : > { %3144 = vmatpush1.bf16.msra.mxu1 %v3143_v61  ;;  %v606_v36 = vrot.slane %v3935_v34, %v605_v33 }
  0x3a   : > { %3145 = vmatprep.subr.bf16.mxu1 %v3466_v8 }
  0x3b   : > { %3114 = vmatpush1.bf16.msra.mxu0 %v3113_v40 }
  0x3c   : > { %689 = vmatprep.subr.mxu0 %v599_v43 }
  0x3d   : > { %3147 = vmatpush1.bf16.msra.mxu1 %v3146_v2 }
  0x3e   : > { %3148 = vmatprep.subr.bf16.mxu1 %v3466_v8 }
  0x3f   : > { %690 = vmatpush1.msra.mxu0 %v598_v49 }
  0x40   : > { %702 = vmatmul.mubr.f32.vlgmr.msra.gmra.mrb[0].mxu0 %v3817_v50  ;;  %3154 = vmatprep.subr.bf16.mxu0 %v3466_v8 }
  0x41   : > { %3156 = vmatpush3.bf16.msra.mxu0 %v3155_v51  ;;  %2502 = vmatprep.mubr.msk.f32.mxu0 %vm618_vm0, %v3820_v52 }
  0x42   : > { %3157 = vmatprep.subr.bf16.mxu0 %v3466_v8  ;;  %3150 = vmatpush1.bf16.msra.mxu1 %v3149_v7 }
  0x43   : > { %3151 = vmatprep.subr.bf16.mxu1 %v3466_v8 }
  0x44   : > { %708 = vmatmul.mubr.f32.gmra.mrb[2].mxu0 %v510_v58 }
  0x45   : > { %2503 = vmatprep.mubr.msk.f32.mxu0 %vm618_vm0, %v513_v60  ;;  %3159 = vmatpush3.bf16.msra.mxu0 %v3158_v59 }
  0x46   : > { %3153 = vmatpush1.bf16.msra.mxu1 %v3152_v16 }
  0x47   : > { %790 = vmatprep.subr.mxu1 %v3467_v14 }
  0x48   : > { %714 = vmatmul.mubr.f32.gmra.mrb[4].mxu0 %v512_v0 }
  0x49   : > { %2504 = vmatprep.mubr.msk.f32.mxu0 %vm618_vm0, %v515_v1 }
  0x4a   : > { %791 = vmatpush1.msra.mxu1 %v600_v17 }
  0x4b   : > { %803 = vmatmul.mubr.f32.vlgmr.msra.gmra.mrb[0].mxu1 %v3817_v50  ;;  %3160 = vmatprep.subr.bf16.mxu1 %v3466_v8 }
  0x4c   : > { %720 = vmatmul.mubr.f32.gmra.mrb[6].mxu0 %v514_v5  ;;  %2508 = vmatprep.mubr.msk.f32.mxu1 %vm618_vm0, %v3820_v52 }
  0x4d   : > { %2505 = vmatprep.mubr.msk.f32.mxu0 %vm618_vm0, %v517_v6  ;;  %3162 = vmatpush3.bf16.msra.mxu1 %v3161_v20  ;;  %v613_v20 = vsub.s32 2, %v3929_v32 }
  0x4e   : > { %3163 = vmatprep.subr.bf16.mxu1 %v3466_v8 }
  0x4f   : > { %808 = vmatmul.mubr.f32.gmra.mrb[2].mxu1 %v510_v58  ;;  %v614_v21 = vrot.slane %v3935_v34, %v613_v20 }
  0x50   : > { %726 = vmatmul.mubr.f32.gmra.mrb[8].mxu0 %v516_v9  ;;  %2509 = vmatprep.mubr.msk.f32.mxu1 %vm618_vm0, %v513_v60 }
  0x51   : > { %2506 = vmatprep.mubr.msk.f32.mxu0 %vm618_vm0, %v519_v10  ;;  %3165 = vmatpush3.bf16.msra.mxu1 %v3164_v23 }
  0x52   : > { %3166 = vmatprep.subr.bf16.mxu1 %v3466_v8 }
  0x53   : > { %813 = vmatmul.mubr.f32.gmra.mrb[4].mxu1 %v512_v0 }
  0x54   : > { %732 = vmatmul.mubr.f32.gmra.mrb[10].mxu0 %v518_v11  ;;  %2510 = vmatprep.mubr.msk.f32.mxu1 %vm618_vm0, %v515_v1 }
  0x55   : > { %2952 = vmatprep.mubr.msk.f32.mxu0 %vm3468_vm1, %v3467_v14  ;;  %3168 = vmatpush3.bf16.msra.mxu1 %v3167_v26 }
  0x56   : > { %3169 = vmatprep.subr.bf16.mxu1 %v3466_v8 }
  0x57   : > { %818 = vmatmul.mubr.f32.gmra.mrb[6].mxu1 %v514_v5 }
  0x58   : > { %2953 = vmatmul.mubr.msk.f32.vlgmr.msra.gmra.mrb[12].mxu0 %vm882_vm2, %v870_v12  ;;  %2511 = vmatprep.mubr.msk.f32.mxu1 %vm618_vm0, %v517_v6  ;;  %v1049_v12 = vld [vmem:[%s4829_s5 + $0x8] sm:$0xff] }
  0x59   : > { %1373 = vmatprep.mubr.f32.mxu0 %v3467_v14  ;;  %3171 = vmatpush3.bf16.msra.mxu1 %v3170_v29 }
  0x5a   : > { %2971 = vmatprep.subr.mxu1 %v3467_v14 }
  0x5b   : > { %823 = vmatmul.mubr.f32.gmra.mrb[8].mxu1 %v516_v9  ;;  %v2513_v9 = vld [vmem:[%s4826_s2] ss:$0 sm:$0xff] }
  0x5c   : > { %2512 = vmatprep.mubr.msk.f32.mxu1 %vm618_vm0, %v519_v10  ;;  %vm2405_vm0 = vcmask 39936  }
  0x5d   : > { %2972 = vmatpush3.msra.mxu1 %v965_v30 }
  0x5e   : > { %3172 = vmatprep.subr.bf16.mxu1 %v3466_v8 }
  0x5f   : > { %828 = vmatmul.mubr.f32.gmra.mrb[10].mxu1 %v518_v11  ;;  %v1048_v11 = vld [vmem:[%s4829_s5] sm:$0xff] }
  0x60   : > { %2973 = vmatprep.mubr.msk.f32.mxu1 %vm3468_vm1, %v3467_v14  ;;  %v3173_v18 = vpack.c.bf16 %v1049_v12, %v1048_v11  ;;  %v1172_v11 = vld [vmem:[%s4831_s7 + $0x78] sm:$0xff]  ;;  %v1170_v12 = vld [vmem:[%s4831_s7 + $0x68] sm:$0xff] }
 0x113   : > { %v703_v38 = vpop.f32.mrb[0].mxu0 }
 0x114   : > { %v704_v39 = vadd.f32 %v703_v38, %v606_v36  ;;  %v705_v40 = vpop.f32.mrb[1].mxu0 }
 0x115   : > { %v706_v41 = vadd.f32 %v705_v40, %v610_v37 }
 0x116   : > { %v833_v42 = vmax.f32 %v704_v39, 0.0 }
 0x117   : > { %v834_v43 = vmax.f32 %v706_v41, 0.0  ;;  %v709_v44 = vpop.f32.mrb[2].mxu0 }
 0x118   : > { %851 = vst [vmem:[%s3948_s29] sm:$0xff] %v833_v42  ;;  %v710_v45 = vadd.f32 %v709_v44, %v606_v36  ;;  %v711_v46 = vpop.f32.mrb[3].mxu0 }
 0x119   : > { %852 = vst [vmem:[%s3948_s29 + $0x8] sm:$0xff] %v834_v43  ;;  %v712_v47 = vadd.f32 %v711_v46, %v610_v37 }
 0x11a   : > { %v836_v48 = vmax.f32 %v710_v45, 0.0 }
 0x11b   : > { %v837_v49 = vmax.f32 %v712_v47, 0.0  ;;  %v715_v50 = vpop.f32.mrb[4].mxu0 }
 0x11c   : > { %855 = vst [vmem:[%s3948_s29 + $0x18] sm:$0xff] %v836_v48  ;;  %v716_v51 = vadd.f32 %v715_v50, %v606_v36  ;;  %v717_v52 = vpop.f32.mrb[5].mxu0  ;;  %v1050_v48 = vld [vmem:[%s4829_s5 + $0x10] sm:$0xff] }
 0x11d   : > { %856 = vst [vmem:[%s3948_s29 + $0x20] sm:$0xff] %v837_v49  ;;  %v718_v53 = vadd.f32 %v717_v52, %v610_v37  ;;  %v1051_v49 = vld [vmem:[%s4829_s5 + $0x18] sm:$0xff]  ;;  %v1052_v52 = vld [vmem:[%s4829_s5 + $0x20] sm:$0xf] }
 0x11e   : > { %v839_v54 = vmax.f32 %v716_v51, 0.0  ;;  %v804_v22 = vpop.f32.mrb[0].mxu1  ;;  %v3176_v50 = vpack.c.bf16 %v1051_v49, %v1050_v48 }
 0x11f   : > { %v840_v55 = vmax.f32 %v718_v53, 0.0  ;;  %v721_v56 = vpop.f32.mrb[6].mxu0  ;;  %v805_v23 = vadd.f32 %v804_v22, %v614_v21  ;;  %v806_v24 = vpop.f32.mrb[1].mxu1  ;;  %v2515_v53 = vld [vmem:[%s4828_s4] ss:$0 sm:$0xff]  ;;  %v1183_v22 = vld [vmem:[%s4831_s7 + $0xd0] sm:$0xff] }
 0x120   : > { %858 = vst [vmem:[%s3948_s29 + $0x30] sm:$0xff] %v839_v54  ;;  %v722_v57 = vadd.f32 %v721_v56, %v606_v36  ;;  %v723_v58 = vpop.f32.mrb[7].mxu0  ;;  %v1177_v24 = vld [vmem:[%s4831_s7 + $0xa0] sm:$0xff] }
 0x121   : > { %859 = vst [vmem:[%s3948_s29 + $0x38] sm:$0xff] %v840_v55  ;;  %v724_v59 = vadd.f32 %v723_v58, %v610_v37  ;;  %v835_v25 = vmax.f32 %v805_v23, 0.0  ;;  %v1158_v58 = vld [vmem:[%s4831_s7 + $0x8] sm:$0xff] }
 0x122   : > { %v842_v60 = vmax.f32 %v722_v57, 0.0  ;;  %v809_v26 = vpop.f32.mrb[2].mxu1 }
 0x123   : > { %v843_v61 = vmax.f32 %v724_v59, 0.0  ;;  %v727_v62 = vpop.f32.mrb[8].mxu0  ;;  %854 = vst.msk [vmem:[%s3948_s29 + $0x10] sm:$0xff] %vm853_vm3, %v835_v25  ;;  %v810_v27 = vadd.f32 %v809_v26, %v614_v21  ;;  %v811_v28 = vpop.f32.mrb[3].mxu1  ;;  %v1163_v59 = vld [vmem:[%s4831_s7 + $0x30] sm:$0xff]  ;;  %v1182_v25 = vld [vmem:[%s4831_s7 + $0xc8] sm:$0xff] }
 0x124   : > { %861 = vst [vmem:[%s3948_s29 + $0x48] sm:$0xff] %v842_v60  ;;  %v728_v63 = vadd.f32 %v727_v62, %v606_v36  ;;  %v729_v0 = vpop.f32.mrb[9].mxu0  ;;  %v1157_v60 = vld [vmem:[%s4831_s7] sm:$0xff]  ;;  %v1162_v62 = vld [vmem:[%s4831_s7 + $0x28] sm:$0xff]  ;;  %v1180_v26 = vld [vmem:[%s4831_s7 + $0xb8] sm:$0xff] }
 0x125   : > { %862 = vst [vmem:[%s3948_s29 + $0x50] sm:$0xff] %v843_v61  ;;  %v730_v1 = vadd.f32 %v729_v0, %v610_v37  ;;  %v838_v29 = vmax.f32 %v810_v27, 0.0  ;;  %v3178_v61 = vpack.c.bf16 %v1163_v59, %v1158_v58  ;;  %v1165_v0 = vld [vmem:[%s4831_s7 + $0x40] sm:$0xff]  ;;  %v3188_v27 = vpack.c.bf16 %v1182_v25, %v1177_v24  ;;  %v1176_v58 = vld [vmem:[%s4831_s7 + $0x98] sm:$0xff] }
 0x126   : > { %v845_v2 = vmax.f32 %v728_v63, 0.0  ;;  %v814_v30 = vpop.f32.mrb[4].mxu1  ;;  %v1160_v63 = vld [vmem:[%s4831_s7 + $0x18] sm:$0xff]  ;;  %v1185_v28 = vld [vmem:[%s4831_s7 + $0xe0] sm:$0xff] }
 0x127   : > { %v846_v3 = vmax.f32 %v730_v1, 0.0  ;;  %v733_v4 = vpop.f32.mrb[10].mxu0  ;;  %857 = vst.msk [vmem:[%s3948_s29 + $0x28] sm:$0xff] %vm853_vm3, %v838_v29  ;;  %v815_v31 = vadd.f32 %v814_v30, %v614_v21  ;;  %v3180_v1 = vpack.c.bf16 %v1162_v62, %v1157_v60  ;;  %v1179_v29 = vld [vmem:[%s4831_s7 + $0xb0] sm:$0xff]  ;;  %v1184_v30 = vld [vmem:[%s4831_s7 + $0xd8] sm:$0xff]  ;;  %v2552_v25 = vld [vmem:[%s4833_s9 + $0x300] sm:$0xff] }
 0x128   : > { %864 = vst [vmem:[%s3948_s29 + $0x60] sm:$0xff] %v845_v2  ;;  %v734_v5 = vadd.f32 %v733_v4, %v606_v36  ;;  %v735_v6 = vpop.f32.mrb[11].mxu0  ;;  %v816_v36 = vpop.f32.mrb[5].mxu1  ;;  %v3190_v2 = vpack.c.bf16 %v1165_v0, %v1160_v63  ;;  %v1164_v4 = vld [vmem:[%s4831_s7 + $0x38] sm:$0xff]  ;;  %v2530_v62 = vld [vmem:[%s4833_s9 + $0x250] sm:$0xff]  ;;  %v2548_v0 = vld [vmem:[%s4833_s9 + $0x2e0] sm:$0xff] }
 0x129   : > { %865 = vst [vmem:[%s3948_s29 + $0x68] sm:$0xff] %v846_v3  ;;  %v736_v7 = vadd.f32 %v735_v6, %v610_v37  ;;  %v841_v37 = vmax.f32 %v815_v31, 0.0  ;;  %v1159_v3 = vld [vmem:[%s4831_s7 + $0x10] sm:$0xff]  ;;  %v1168_v6 = vld [vmem:[%s4831_s7 + $0x58] sm:$0xff]  ;;  %v3198_v31 = vpack.c.bf16 %v1185_v28, %v1180_v26  ;;  %v3200_v36 = vpack.c.bf16 %v1184_v30, %v1179_v29  ;;  %v2553_v26 = vld [vmem:[%s4833_s9 + $0x308] sm:$0xff] }
 0x12a   : > { %v848_v10 = vmax.f32 %v734_v5, 0.0  ;;  %v819_v34 = vpop.f32.mrb[6].mxu1  ;;  %v3192_v5 = vpack.c.bf16 %v1164_v4, %v1159_v3  ;;  %3191 = vmatprep.subr.bf16.mxu0 %v3190_v2  ;;  %v2531_v63 = vld [vmem:[%s4833_s9 + $0x258] sm:$0xff]  ;;  %v1181_v3 = vld [vmem:[%s4831_s7 + $0xc0] sm:$0xff]  ;;  %v1186_v4 = vld [vmem:[%s4831_s7 + $0xe8] sm:$0xff] }
 0x12b   : > { %v849_v13 = vmax.f32 %v736_v7, 0.0  ;;  %v952_v15 = vpop.f32.mrb[12].mxu0  ;;  %860 = vst.msk [vmem:[%s3948_s29 + $0x40] sm:$0xff] %vm853_vm3, %v841_v37  ;;  %v820_v38 = vadd.f32 %v819_v34, %v614_v21  ;;  %v821_v39 = vpop.f32.mrb[7].mxu1  ;;  %v1173_v7 = vld [vmem:[%s4831_s7 + $0x80] sm:$0xff]  ;;  %v2579_v24 = vld [vmem:[%s4833_s9 + $0x3d8] sm:$0xff] }
 0x12c   : > { %867 = vst [vmem:[%s3948_s29 + $0x78] sm:$0xff] %v848_v10  ;;  %v953_v16 = vadd.f32 %v2513_v9, %v952_v15  ;;  %v2954_v17 = vpop.f32.mrb[13].mxu0  ;;  %3193 = vmatpush1.bf16.msra.mxu0 %v3192_v5  ;;  %v3182_v9 = vpack.c.bf16 %v1173_v7, %v1168_v6  ;;  %v1167_v10 = vld [vmem:[%s4831_s7 + $0x50] sm:$0xff]  ;;  %v1188_v37 = vld [vmem:[%s4831_s7 + $0xf8] sm:$0x3f]  ;;  %v3217_v5 = vpack.c.bf16 %v2531_v63, %v2530_v62  ;;  %v2532_v7 = vld [vmem:[%s4833_s9 + $0x260] sm:$0xff] }
 0x12d   : > { %868 = vst [vmem:[%s3948_s29 + $0x80] sm:$0xff] %v849_v13  ;;  %v844_v40 = vmax.f32 %v820_v38, 0.0  ;;  %v3184_v13 = vpack.c.bf16 %v1172_v11, %v1167_v10  ;;  %v1175_v15 = vld [vmem:[%s4831_s7 + $0x90] sm:$0xff]  ;;  %v1174_v17 = vld [vmem:[%s4831_s7 + $0x88] sm:$0xff]  ;;  %v2517_v34 = vld [vmem:[%s4830_s6] ss:$0 sm:$0xff] }
 0x12e   : > { %v956_v19 = vmax.f32 %v953_v16, 0.0  ;;  %v824_v41 = vpop.f32.mrb[8].mxu1  ;;  %v1169_v16 = vld [vmem:[%s4831_s7 + $0x60] sm:$0xff]  ;;  %v1190_v38 = vld [vmem:[%s4831_s7 + $0x108] sm:$0x3f]  ;;  %v2550_v10 = vld [vmem:[%s4833_s9 + $0x2f0] sm:$0xff] }
 0x12f   : > { %863 = vst.msk [vmem:[%s3948_s29 + $0x58] sm:$0xff] %vm853_vm3, %v844_v40  ;;  %v825_v42 = vadd.f32 %v824_v41, %v614_v21  ;;  %v826_v43 = vpop.f32.mrb[9].mxu1  ;;  %v1187_v39 = vld [vmem:[%s4831_s7 + $0xf0] sm:$0x3f]  ;;  %v2551_v11 = vld [vmem:[%s4833_s9 + $0x2f8] sm:$0xff]  ;;  %v2541_v62 = vld [vmem:[%s4833_s9 + $0x2a8] sm:$0xff] }
 0x130   : > { %2974 = vmatmul.mubr.msk.f32.vlgmr.msra.gmra.mrb[12].mxu1 %vm973_vm4, %v956_v19  ;;  %v3196_v19 = vpack.c.bf16 %v1174_v17, %v1169_v16  ;;  %v1189_v43 = vld [vmem:[%s4831_s7 + $0x100] sm:$0x3f]  ;;  %v2577_v16 = vld [vmem:[%s4833_s9 + $0x3c8] sm:$0xff]  ;;  %v2562_v30 = vld [vmem:[%s4833_s9 + $0x350] sm:$0xff] }
 0x131   : > { %3174 = vmatpush3.bf16.msra.mxu1 %v3173_v18  ;;  %2986 = vmatprep.mubr.msk.f32.mxu1 %vm3468_vm1, %v3467_v14  ;;  %v847_v44 = vmax.f32 %v825_v42, 0.0  ;;  %v3194_v18 = vpack.c.bf16 %v1175_v15, %v1170_v12  ;;  %v3209_v12 = vpack.c.bf16 %v1186_v4, %v1181_v3  ;;  %v2560_v17 = vld [vmem:[%s4833_s9 + $0x340] sm:$0xff] }
 0x132   : > { %3175 = vmatprep.subr.bf16.mxu1 %v3466_v8  ;;  %v829_v45 = vpop.f32.mrb[10].mxu1  ;;  %v2584_v63 = vld [vmem:[%s4833_s9 + $0x400] sm:$0xff] }
 0x133   : > { %866 = vst.msk [vmem:[%s3948_s29 + $0x70] sm:$0xff] %vm853_vm3, %v847_v44  ;;  %v830_v46 = vadd.f32 %v829_v45, %v614_v21  ;;  %v831_v47 = vpop.f32.mrb[11].mxu1  ;;  %v1178_v21 = vld [vmem:[%s4831_s7 + $0xa8] sm:$0xff]  ;;  %3195 = vmatprep.subr.bf16.mxu0 %v3194_v18  ;;  %v2544_v45 = vld [vmem:[%s4833_s9 + $0x2c0] sm:$0xff] }
 0x134   : > { %v3186_v23 = vpack.c.bf16 %v1183_v22, %v1178_v21  ;;  %3197 = vmatpush1.bf16.msra.mxu0 %v3196_v19  ;;  %v2561_v18 = vld [vmem:[%s4833_s9 + $0x348] sm:$0xff]  ;;  %v3223_v19 = vpack.c.bf16 %v2551_v11, %v2550_v10  ;;  %v2578_v21 = vld [vmem:[%s4833_s9 + $0x3d0] sm:$0xff]  ;;  %v2568_v4 = vld [vmem:[%s4833_s9 + $0x380] sm:$0xff] }
 0x135   : > { %v850_v51 = vmax.f32 %v830_v46, 0.0  ;;  %3177 = vmatpush3.bf16.msra.mxu1 %v3176_v50  ;;  %3199 = vmatprep.subr.bf16.mxu0 %v3198_v31  ;;  %v2545_v46 = vld [vmem:[%s4833_s9 + $0x2c8] sm:$0xff]  ;;  %v1161_v50 = vld [vmem:[%s4831_s7 + $0x20] sm:$0xff]  ;;  %v2534_v22 = vld [vmem:[%s4833_s9 + $0x270] sm:$0xff]  ;;  %v3245_v29 = vpack.c.bf16 %v2561_v18, %v2560_v17 }
 0x136   : > { %2984 = vmatprep.subr.mxu1 %v3467_v14  ;;  %v3211_v47 = vpack.c.bf16 %v2545_v46, %v2544_v45  ;;  %v2563_v31 = vld [vmem:[%s4833_s9 + $0x358] sm:$0xff]  ;;  %v2565_v45 = vld [vmem:[%s4833_s9 + $0x368] sm:$0xff]  ;;  %v2570_v11 = vld [vmem:[%s4833_s9 + $0x390] sm:$0xff] }
 0x137   : > { %869 = vst.msk [vmem:[%s3948_s29 + $0x88] sm:$0xff] %vm853_vm3, %v850_v51  ;;  %v1166_v51 = vld [vmem:[%s4831_s7 + $0x48] sm:$0xff]  ;;  %v2572_v18 = vld [vmem:[%s4833_s9 + $0x3a0] sm:$0xff] }
 0x138   : > { %3201 = vmatpush1.bf16.msra.mxu0 %v3200_v36 }
 0x139   : > { %2985 = vmatpush3.msk.msra.mxu1 %vm1064_vm5, %v1052_v52  ;;  %2523 = vmatprep.subr.msk.mxu0 %vm1222_vm9, %v1190_v38  ;;  %v2528_v52 = vld [vmem:[%s4833_s9 + $0x240] sm:$0xff] }
 0x13a   : > { %3179 = vmatprep.subr.bf16.mxu1 %v3178_v61  ;;  %v2536_v38 = vld [vmem:[%s4833_s9 + $0x280] sm:$0xff] }
 0x13c   : > { %2524 = vmatpush1.msk.msra.mxu0 %vm1222_vm9, %v1189_v43  ;;  %v3249_v43 = vpack.c.bf16 %v2563_v31, %v2562_v30  ;;  %v2574_v31 = vld [vmem:[%s4833_s9 + $0x3b0] sm:$0xff] }
 0x13d   : > { %3212 = vmatprep.subr.bf16.mxu0 %v3211_v47 }
 0x203   : > { %v1043_v54 = vpop.f32.mrb[12].mxu1 }
 0x204   : > { %v1044_v55 = vadd.f32 %v2515_v53, %v1043_v54  ;;  %v2975_v56 = vpop.f32.mrb[13].mxu1  ;;  %v2529_v53 = vld [vmem:[%s4833_s9 + $0x248] sm:$0xff]  ;;  %v2546_v54 = vld [vmem:[%s4833_s9 + $0x2d0] sm:$0xff] }
 0x205   : > { %v3203_v56 = vpack.c.bf16 %v1166_v51, %v1161_v50  ;;  %v3213_v59 = vpack.c.bf16 %v2529_v53, %v2528_v52  ;;  %v2538_v50 = vld [vmem:[%s4833_s9 + $0x290] sm:$0xff]  ;;  %v2539_v51 = vld [vmem:[%s4833_s9 + $0x298] sm:$0xff]  ;;  %v2556_v53 = vld [vmem:[%s4833_s9 + $0x320] sm:$0xff] }
 0x206   : > { %v1047_v57 = vmax.f32 %v1044_v55, 0.0  ;;  %v2547_v55 = vld [vmem:[%s4833_s9 + $0x2d8] sm:$0xff] }
 0x207   : > { %v3215_v61 = vpack.c.bf16 %v2547_v55, %v2546_v54  ;;  %v2583_v52 = vld [vmem:[%s4833_s9 + $0x3f8] sm:$0xff]  ;;  %v2557_v54 = vld [vmem:[%s4833_s9 + $0x328] sm:$0xff] }
 0x208   : > { %2987 = vmatmul.mubr.msk.f32.vlgmr.msra.gmra.mrb[14].mxu1 %vm1060_vm6, %v1047_v57  ;;  %v1171_v57 = vld [vmem:[%s4831_s7 + $0x70] sm:$0xff] }
 0x209   : > { %1302 = vmatprep.mubr.f32.mxu1 %v3467_v14  ;;  %3181 = vmatpush1.bf16.msra.mxu1 %v3180_v1  ;;  %v2549_v1 = vld [vmem:[%s4833_s9 + $0x2e8] sm:$0xff]  ;;  %v3206_v2 = vpack.c.bf16 %v1176_v58, %v1171_v57  ;;  %v3233_v57 = vpack.c.bf16 %v2539_v51, %v2538_v50  ;;  %v2592_v50 = vld [vmem:[%s4833_s9 + $0x440] sm:$0xff] }
 0x20a   : > { %3183 = vmatprep.subr.bf16.mxu1 %v3182_v9  ;;  %v3219_v6 = vpack.c.bf16 %v2549_v1, %v2548_v0  ;;  %v2533_v9 = vld [vmem:[%s4833_s9 + $0x268] sm:$0xff] }
 0x20b   : > { %v3221_v15 = vpack.c.bf16 %v2533_v9, %v2532_v7  ;;  %v2585_v0 = vld [vmem:[%s4833_s9 + $0x408] sm:$0xff]  ;;  %v2587_v7 = vld [vmem:[%s4833_s9 + $0x418] sm:$0xff] }
 0x20c   : > { %v3259_v3 = vpack.c.bf16 %v2585_v0, %v2584_v63 }
 0x20d   : > { %3185 = vmatpush1.bf16.msra.mxu1 %v3184_v13  ;;  %v2576_v13 = vld [vmem:[%s4833_s9 + $0x3c0] sm:$0xff] }
 0x20e   : > { %3187 = vmatprep.subr.bf16.mxu1 %v3186_v23  ;;  %v2535_v23 = vld [vmem:[%s4833_s9 + $0x278] sm:$0xff]  ;;  %v3243_v28 = vpack.c.bf16 %v2577_v16, %v2576_v13  ;;  %v2588_v13 = vld [vmem:[%s4833_s9 + $0x420] sm:$0xff] }
 0x20f   : > { %v3225_v36 = vpack.c.bf16 %v2535_v23, %v2534_v22  ;;  %v2558_v22 = vld [vmem:[%s4833_s9 + $0x330] sm:$0xff]  ;;  %v2559_v23 = vld [vmem:[%s4833_s9 + $0x338] sm:$0xff] }
 0x211   : > { %3189 = vmatpush1.bf16.msra.mxu1 %v3188_v27  ;;  %v1191_v27 = vld [vmem:[%s4831_s7 + $0x110] sm:$0x3f] }
 0x212   : > { %2520 = vmatprep.subr.msk.mxu1 %vm1222_vm9, %v1188_v37  ;;  %v3247_v37 = vpack.c.bf16 %v2579_v24, %v2578_v21  ;;  %v2590_v24 = vld [vmem:[%s4833_s9 + $0x430] sm:$0xff] }
 0x215   : > { %2521 = vmatpush1.msk.msra.mxu1 %vm1222_vm9, %v1187_v39  ;;  %v2537_v39 = vld [vmem:[%s4833_s9 + $0x288] sm:$0xff] }
 0x216   : > { %3202 = vmatprep.subr.bf16.mxu1 %v3466_v8  ;;  %v3229_v46 = vpack.c.bf16 %v2537_v39, %v2536_v38  ;;  %v4328_v39 = vld [vmem:[#allocation3] sm:$0xff] }
 0x217   : > { %1465 = vst.msk [vmem:[#allocation3 + $0x48] sm:$0x3] %vm1464_vm13, %v4328_v39 }
 0x2db   : > { %v1134_v40 = vpop.f32.mrb[14].mxu1 }
 0x2dc   : > { %v1135_v41 = vadd.f32 %v2517_v34, %v1134_v40  ;;  %v2988_v42 = vpop.f32.mrb[15].mxu1  ;;  %v3227_v34 = vpack.c.bf16 %v2553_v26, %v2552_v25  ;;  %v2581_v40 = vld [vmem:[%s4833_s9 + $0x3e8] sm:$0xff]  ;;  %v3239_v25 = vpack.c.bf16 %v2559_v23, %v2558_v22  ;;  %v2591_v26 = vld [vmem:[%s4833_s9 + $0x438] sm:$0xff]  ;;  %v1520_v23 = vld [vmem:[%s4833_s9 + $0xb0] sm:$0xff] }
 0x2dd   : > { %v2555_v42 = vld [vmem:[%s4833_s9 + $0x318] sm:$0xff] }
 0x2de   : > { %v1138_v44 = vmax.f32 %v1135_v41, 0.0  ;;  %v2554_v41 = vld [vmem:[%s4833_s9 + $0x310] sm:$0xff] }
 0x2e0   : > { %1146 = vrot.lane.b32.xlu0 %v1138_v44, %s3469_s26  ;;  %1144 = vst.msk [vmem:[#allocation2 + $0x2] sm:$0xff] %vm1143_vm10, %v1138_v44 }
 0x2e4   : > { %1151 = vrot.lane.b32.xlu0 %v1138_v44, %s3470_s23  ;;  %v2564_v44 = vld [vmem:[%s4833_s9 + $0x360] sm:$0xff] }
 0x2e5   : > { %v3253_v55 = vpack.c.bf16 %v2565_v45, %v2564_v44 }
 0x352   : > { %v1147_v48 = vpop.permute.xlu0 %1146 }
 0x353   : > { %1150 = vst.msk [vmem:[#allocation2 + $0x1] sm:$0xff] %vm1149_vm11, %v1147_v48  ;;  %v2582_v48 = vld [vmem:[%s4833_s9 + $0x3f0] sm:$0xff] }
 0x354   : > { %v3255_v58 = vpack.c.bf16 %v2583_v52, %v2582_v48 }
 0x356   : > { %v1152_v49 = vpop.permute.xlu0 %1151 }
 0x357   : > { %1155 = vst.msk [vmem:[#allocation2] sm:$0xff] %vm1154_vm12, %v1152_v49  ;;  %v3231_v49 = vpack.c.bf16 %v2555_v42, %v2554_v41  ;;  %v3471_v41 = vmov 0   ;;  %v1192_v42 = vld [vmem:[%s4832_s8] sm:$0x1f] }
 0x358   : > { %3455 = vset.pattern.permute.xlu1 %v3471_v41  ;;  %3456 = vset.pattern.permute.xlu0 %v3471_v41  ;;  %v1197_v44 = vrot.slane %v1192_v42, %v605_v33  ;;  %v1205_v45 = vrot.slane %v1192_v42, %v613_v20  ;;  %v2593_v33 = vld [vmem:[%s4833_s9 + $0x448] sm:$0xff]  ;;  %v1498_v20 = vld [vmem:[%s4833_s9] sm:$0xff] }
 0x359   : > { %v3276_v63 = vpack.c.bf16 %v2593_v33, %v2592_v50  ;;  %v1530_v50 = vld [vmem:[%s4833_s9 + $0x100] sm:$0xff]  ;;  %v1548_v33 = vld [vmem:[%s4833_s9 + $0x190] sm:$0xff] }
 0x35e   : > { %v1156_v60 = vld [vmem:[#allocation2 + $0x1] sm:$0xff] }
 0x35f   : > { %2522 = vmatmul.mubr.msk.f32.vlgmr.msra.gmra.mrb[16].mxu1 %vm1139_vm7, %v1156_v60  ;;  %2525 = vmatmul.mubr.msk.f32.vlgmr.msra.gmra.mrb[14].mxu0 %vm1139_vm7, %v1156_v60 }
 0x360   : > { %3204 = vmatpush3.bf16.msra.mxu1 %v3203_v56  ;;  %3003 = vmatprep.mubr.msk.f32.mxu1 %vm3468_vm1, %v3467_v14  ;;  %v2566_v56 = vld [vmem:[%s4833_s9 + $0x370] sm:$0xff] }
 0x361   : > { %3205 = vmatprep.subr.bf16.mxu1 %v3466_v8  ;;  %3214 = vmatpush3.bf16.msra.mxu0 %v3213_v59  ;;  %v2567_v59 = vld [vmem:[%s4833_s9 + $0x378] sm:$0xff] }
 0x362   : > { %3216 = vmatprep.subr.bf16.mxu0 %v3215_v61  ;;  %v2540_v61 = vld [vmem:[%s4833_s9 + $0x2a0] sm:$0xff]  ;;  %v3257_v1 = vpack.c.bf16 %v2567_v59, %v2566_v56 }
 0x364   : > { %3207 = vmatpush3.bf16.msra.mxu1 %v3206_v2  ;;  %v3237_v2 = vpack.c.bf16 %v2541_v62, %v2540_v61 }
 0x365   : > { %3208 = vmatprep.subr.bf16.mxu1 %v3466_v8  ;;  %3218 = vmatpush3.bf16.msra.mxu0 %v3217_v5  ;;  %v2569_v5 = vld [vmem:[%s4833_s9 + $0x388] sm:$0xff] }
 0x366   : > { %3220 = vmatprep.subr.bf16.mxu0 %v3219_v6  ;;  %v2586_v6 = vld [vmem:[%s4833_s9 + $0x410] sm:$0xff]  ;;  %v3261_v9 = vpack.c.bf16 %v2569_v5, %v2568_v4  ;;  %v2595_v5 = vld [vmem:[%s4833_s9 + $0x458] sm:$0xff] }
 0x367   : > { %v3263_v10 = vpack.c.bf16 %v2587_v7, %v2586_v6  ;;  %v1500_v6 = vld [vmem:[%s4833_s9 + $0x10] sm:$0xff]  ;;  %v1501_v7 = vld [vmem:[%s4833_s9 + $0x18] sm:$0xff] }
 0x368   : > { %3210 = vmatpush3.bf16.msra.mxu1 %v3209_v12  ;;  %v2571_v12 = vld [vmem:[%s4833_s9 + $0x398] sm:$0xff] }
 0x369   : > { %3001 = vmatprep.subr.mxu1 %v3467_v14  ;;  %3222 = vmatpush3.bf16.msra.mxu0 %v3221_v15  ;;  %v2580_v14 = vld [vmem:[%s4833_s9 + $0x3e0] sm:$0xff]  ;;  %v2589_v15 = vld [vmem:[%s4833_s9 + $0x428] sm:$0xff]  ;;  %v3265_v16 = vpack.c.bf16 %v2571_v12, %v2570_v11 }
 0x36a   : > { %3224 = vmatprep.subr.bf16.mxu0 %v3223_v19  ;;  %v3251_v47 = vpack.c.bf16 %v2581_v40, %v2580_v14  ;;  %v3267_v17 = vpack.c.bf16 %v2589_v15, %v2588_v13  ;;  %v2573_v19 = vld [vmem:[%s4833_s9 + $0x3a8] sm:$0xff]  ;;  %v1514_v14 = vld [vmem:[%s4833_s9 + $0x80] sm:$0xff]  ;;  %v1212_v13 = vsub.s32 4, %v3929_v32 }
 0x36b   : > { %v3269_v21 = vpack.c.bf16 %v2573_v19, %v2572_v18  ;;  %v2675_v40 = vld [vmem:[#allocation4] ss:$0 sm:$0xff]  ;;  %v1519_v12 = vld [vmem:[%s4833_s9 + $0xa8] sm:$0xff] }
 0x36c   : > { %3002 = vmatpush3.msk.msra.mxu1 %vm1222_vm9, %v1191_v27  ;;  %v2542_v27 = vld [vmem:[%s4833_s9 + $0x2b0] sm:$0xff]  ;;  %2400 = vperm.xlu1 %3455, %v2675_v40   ;;  %v1518_v11 = vld [vmem:[%s4833_s9 + $0xa0] sm:$0xff]  ;;  %v1213_v22 = vrot.slane %v1192_v42, %v1212_v13  ;;  %v1529_v13 = vld [vmem:[%s4833_s9 + $0xf8] sm:$0xff] }
 0x36d   : > { %3004 = vmatmul.mubr.msk.f32.vlgmr.msra.gmra.mrb[18].mxu1 %vm1139_vm7, %v1156_v60  ;;  %3244 = vmatprep.subr.bf16.mxu1 %v3243_v28  ;;  %v3235_v60 = vpack.c.bf16 %v2557_v54, %v2556_v53  ;;  %v2543_v28 = vld [vmem:[%s4833_s9 + $0x2b8] sm:$0xff]  ;;  %v3295_v18 = vpack.c.bf16 %v1519_v12, %v1518_v11  ;;  %v1502_v19 = vld [vmem:[%s4833_s9 + $0x20] sm:$0xff]  ;;  %v1535_v11 = vld [vmem:[%s4833_s9 + $0x128] sm:$0xff] }
 0x36e   : > { %3246 = vmatpush3.bf16.msra.mxu1 %v3245_v29  ;;  %3226 = vmatpush3.bf16.msra.mxu0 %v3225_v36  ;;  %v3271_v29 = vpack.c.bf16 %v2591_v26, %v2590_v24  ;;  %v3241_v30 = vpack.c.bf16 %v2543_v28, %v2542_v27  ;;  %v2575_v36 = vld [vmem:[%s4833_s9 + $0x3b8] sm:$0xff]  ;;  %v2598_v27 = vld [vmem:[%s4833_s9 + $0x470] sm:$0xff] }
 0x36f   : > { %3248 = vmatprep.subr.bf16.mxu1 %v3247_v37  ;;  %3228 = vmatprep.subr.bf16.mxu0 %v3227_v34  ;;  %v3273_v37 = vpack.c.bf16 %v2575_v36, %v2574_v31  ;;  %v1515_v34 = vld [vmem:[%s4833_s9 + $0x88] sm:$0xff]  ;;  %v1521_v24 = vld [vmem:[%s4833_s9 + $0xb8] sm:$0xff]  ;;  %v1522_v31 = vld [vmem:[%s4833_s9 + $0xc0] sm:$0xff] }
 0x370   : > { %v3287_v38 = vpack.c.bf16 %v1515_v34, %v1514_v14  ;;  %v2599_v28 = vld [vmem:[%s4833_s9 + $0x478] sm:$0xff]  ;;  %v1523_v14 = vld [vmem:[%s4833_s9 + $0xc8] sm:$0xff]  ;;  %v1546_v34 = vld [vmem:[%s4833_s9 + $0x180] sm:$0xff] }
 0x371   : > { %v1528_v12 = vld [vmem:[%s4833_s9 + $0xf0] sm:$0xff] }
 0x372   : > { %3250 = vmatpush3.bf16.msra.mxu1 %v3249_v43  ;;  %3230 = vmatpush3.bf16.msra.mxu0 %v3229_v46  ;;  %v1208_v43 = vsub.s32 3, %v3929_v32  ;;  %v1201_v46 = vrot.slane %v1192_v42, %v609_v35  ;;  %v1499_v35 = vld [vmem:[%s4833_s9 + $0x8] sm:$0xff] }
 0x373   : > { %3252 = vmatprep.subr.bf16.mxu1 %v3251_v47  ;;  %3232 = vmatprep.subr.bf16.mxu0 %v3231_v49  ;;  %v3289_v0 = vpack.c.bf16 %v1499_v35, %v1498_v20  ;;  %v2597_v32 = vld [vmem:[%s4833_s9 + $0x468] sm:$0xff]  ;;  %v1549_v20 = vld [vmem:[%s4833_s9 + $0x198] sm:$0xff] }
 0x374   : > { %v1209_v47 = vrot.slane %v1192_v42, %v1208_v43  ;;  %v3285_v43 = vpack.c.bf16 %v2599_v28, %v2598_v27 }
 0x376   : > { %3254 = vmatpush3.bf16.msra.mxu1 %v3253_v55  ;;  %3234 = vmatpush3.bf16.msra.mxu0 %v3233_v57  ;;  %v1516_v57 = vld [vmem:[%s4833_s9 + $0x90] sm:$0xff] }
 0x377   : > { %3256 = vmatprep.subr.bf16.mxu1 %v3255_v58  ;;  %3236 = vmatprep.subr.bf16.mxu0 %v3235_v60  ;;  %v1517_v58 = vld [vmem:[%s4833_s9 + $0x98] sm:$0xff] }
 0x378   : > { %v3291_v4 = vpack.c.bf16 %v1517_v58, %v1516_v57  ;;  %v1509_v57 = vld [vmem:[%s4833_s9 + $0x58] sm:$0xff] }
 0x37a   : > { %3258 = vmatpush3.bf16.msra.mxu1 %v3257_v1  ;;  %3238 = vmatpush3.bf16.msra.mxu0 %v3237_v2  ;;  %v2594_v1 = vld [vmem:[%s4833_s9 + $0x450] sm:$0xff] }
 0x37b   : > { %3260 = vmatprep.subr.bf16.mxu1 %v3259_v3  ;;  %3240 = vmatprep.subr.bf16.mxu0 %v3239_v25  ;;  %v3279_v15 = vpack.c.bf16 %v2595_v5, %v2594_v1  ;;  %v1551_v1 = vld [vmem:[%s4833_s9 + $0x1a8] sm:$0xff]  ;;  %v1510_v5 = vld [vmem:[%s4833_s9 + $0x60] sm:$0xff] }
 0x37e   : > { %3262 = vmatpush3.bf16.msra.mxu1 %v3261_v9  ;;  %3242 = vmatpush3.bf16.msra.mxu0 %v3241_v30  ;;  %v1505_v30 = vld [vmem:[%s4833_s9 + $0x38] sm:$0xff] }
 0x37f   : > { %3264 = vmatprep.subr.bf16.mxu1 %v3263_v10  ;;  %3275 = vmatprep.subr.bf16.mxu0 %v3466_v8 }
 0x382   : > { %3266 = vmatpush3.bf16.msra.mxu1 %v3265_v16  ;;  %v3293_v16 = vpack.c.bf16 %v1501_v7, %v1500_v6  ;;  %v1511_v6 = vld [vmem:[%s4833_s9 + $0x68] sm:$0xff] }
 0x383   : > { %3268 = vmatprep.subr.bf16.mxu1 %v3267_v17  ;;  %v2596_v17 = vld [vmem:[%s4833_s9 + $0x460] sm:$0xff] }
 0x384   : > { %v3282_v25 = vpack.c.bf16 %v2597_v32, %v2596_v17  ;;  %v3313_v17 = vpack.c.bf16 %v1511_v6, %v1510_v5  ;;  %v1512_v32 = vld [vmem:[%s4833_s9 + $0x70] sm:$0xff] }
 0x386   : > { %3270 = vmatpush3.bf16.msra.mxu1 %v3269_v21  ;;  %v1503_v21 = vld [vmem:[%s4833_s9 + $0x28] sm:$0xff] }
 0x387   : > { %3272 = vmatprep.subr.bf16.mxu1 %v3271_v29  ;;  %v3297_v26 = vpack.c.bf16 %v1503_v21, %v1502_v19  ;;  %v1504_v29 = vld [vmem:[%s4833_s9 + $0x30] sm:$0xff]  ;;  %v3315_v19 = vpack.c.bf16 %v1529_v13, %v1528_v12  ;;  %v2634_v13 = vld [vmem:[%s4833_s9 + $0x580] sm:$0xff] }
 0x38a   : > { %3274 = vmatpush3.bf16.msra.mxu1 %v3273_v37  ;;  %v3299_v37 = vpack.c.bf16 %v1521_v24, %v1520_v23  ;;  %v1536_v23 = vld [vmem:[%s4833_s9 + $0x130] sm:$0xff]  ;;  %v1537_v24 = vld [vmem:[%s4833_s9 + $0x138] sm:$0xff] }
 0x38b   : > { %3288 = vmatprep.subr.bf16.mxu1 %v3287_v38  ;;  %v1547_v38 = vld [vmem:[%s4833_s9 + $0x188] sm:$0xff]  ;;  %v3333_v28 = vpack.c.bf16 %v1537_v24, %v1536_v23 }
 0x432   : > { %v1304_v48 = vpop.f32.mrb[16].mxu1  ;;  %v1375_v49 = vpop.f32.mrb[14].mxu0 }
 0x433   : > { %v1305_v51 = vadd.f32 %v1304_v48, %v1197_v44  ;;  %v1376_v52 = vadd.f32 %v1375_v49, %v1205_v45  ;;  %v1306_v53 = vpop.f32.mrb[17].mxu1  ;;  %v1377_v54 = vpop.f32.mrb[15].mxu0  ;;  %v3301_v44 = vpack.c.bf16 %v1505_v30, %v1504_v29  ;;  %v1506_v45 = vld [vmem:[%s4833_s9 + $0x40] sm:$0xff]  ;;  %v3319_v48 = vpack.c.bf16 %v1547_v38, %v1546_v34  ;;  %v1507_v49 = vld [vmem:[%s4833_s9 + $0x48] sm:$0xff]  ;;  %v1557_v34 = vld [vmem:[%s4833_s9 + $0x1d8] sm:$0xff] }
 0x434   : > { %v1307_v55 = vadd.f32 %v1306_v53, %v1201_v46  ;;  %v1378_v56 = vadd.f32 %v1377_v54, %v1209_v47  ;;  %v3303_v47 = vpack.c.bf16 %v1523_v14, %v1522_v31  ;;  %v1525_v53 = vld [vmem:[%s4833_s9 + $0xd8] sm:$0xff]  ;;  %v3305_v35 = vpack.c.bf16 %v1507_v49, %v1506_v45  ;;  %v1538_v29 = vld [vmem:[%s4833_s9 + $0x140] sm:$0xff]  ;;  %v1539_v31 = vld [vmem:[%s4833_s9 + $0x148] sm:$0xff] }
 0x435   : > { %v1450_v59 = vmax.f32 %v1305_v51, 0.0  ;;  %v1452_v60 = vmax.f32 %v1376_v52, 0.0  ;;  %v1531_v51 = vld [vmem:[%s4833_s9 + $0x108] sm:$0xff]  ;;  %v1524_v52 = vld [vmem:[%s4833_s9 + $0xd0] sm:$0xff]  ;;  %v3337_v38 = vpack.c.bf16 %v1539_v31, %v1538_v29  ;;  %v1565_v45 = vld [vmem:[%s4833_s9 + $0x218] sm:$0xff] }
 0x436   : > { %v1451_v61 = vmax.f32 %v1307_v55, 0.0  ;;  %v1453_v62 = vmax.f32 %v1378_v56, 0.0  ;;  %v3321_v55 = vpack.c.bf16 %v1531_v51, %v1530_v50  ;;  %v1508_v56 = vld [vmem:[%s4833_s9 + $0x50] sm:$0xff]  ;;  %v3307_v58 = vpack.c.bf16 %v1525_v53, %v1524_v52  ;;  %v1542_v51 = vld [vmem:[%s4833_s9 + $0x160] sm:$0xff]  ;;  %v1543_v53 = vld [vmem:[%s4833_s9 + $0x168] sm:$0xff] }
 0x437   : > { %v1471_v2 = vrot.slane %v1450_v59, 7  ;;  %v1473_v3 = vrot.slane %v1452_v60, 7  ;;  %v1556_v14 = vld [vmem:[%s4833_s9 + $0x1d0] sm:$0xff]  ;;  %v2637_v29 = vld [vmem:[%s4833_s9 + $0x598] sm:$0xff] }
 0x438   : > { %v1472_v9 = vrot.slane %v1451_v61, 7  ;;  %v1474_v10 = vrot.slane %v1453_v62, 7  ;;  %1709 = vmatprep.mubr.f32.mxu0 %v1451_v61  ;;  %1779 = vmatprep.mubr.f32.mxu1 %v1453_v62  ;;  %v1526_v61 = vld [vmem:[%s4833_s9 + $0xe0] sm:$0xff]  ;;  %v3323_v62 = vpack.c.bf16 %v1549_v20, %v1548_v33  ;;  %v1567_v33 = vld [vmem:[%s4833_s9 + $0x228] sm:$0xff]  ;;  %v1560_v20 = vld [vmem:[%s4833_s9 + $0x1f0] sm:$0xff] }
 0x439   : > { %1481 = vst [vmem:[#allocation3] sm:$0xfe] %v1471_v2  ;;  %1487 = vst [vmem:[#allocation3 + $0x28] sm:$0x1] %v1471_v2  ;;  %1710 = vmatmul.mubr.f32.vlgmr.msra.gmra.mrb[16].mxu0 %v1450_v59  ;;  %1780 = vmatmul.mubr.f32.vlgmr.msra.gmra.mrb[20].mxu1 %v1452_v60  ;;  %v1532_v59 = vld [vmem:[%s4833_s9 + $0x110] sm:$0xff]  ;;  %v1533_v60 = vld [vmem:[%s4833_s9 + $0x118] sm:$0xff] }
 0x43a   : > { %1483 = vst [vmem:[#allocation3 + $0x10] sm:$0xfe] %v1473_v3  ;;  %1489 = vst [vmem:[#allocation3 + $0x38] sm:$0x1] %v1473_v3  ;;  %3277 = vmatpush3.bf16.msra.mxu0 %v3276_v63  ;;  %3290 = vmatpush3.bf16.msra.mxu1 %v3289_v0  ;;  %v1527_v63 = vld [vmem:[%s4833_s9 + $0xe8] sm:$0xff]  ;;  %v1550_v0 = vld [vmem:[%s4833_s9 + $0x1a0] sm:$0xff]  ;;  %v3309_v3 = vpack.c.bf16 %v1509_v57, %v1508_v56 }
 0x43b   : > { %1482 = vst [vmem:[#allocation3 + $0x8] sm:$0xfe] %v1472_v9  ;;  %1488 = vst [vmem:[#allocation3 + $0x30] sm:$0x1] %v1472_v9  ;;  %3278 = vmatprep.subr.bf16.mxu0 %v3466_v8  ;;  %3292 = vmatprep.subr.bf16.mxu1 %v3291_v4  ;;  %v3325_v4 = vpack.c.bf16 %v1533_v60, %v1532_v59  ;;  %v3311_v7 = vpack.c.bf16 %v1527_v63, %v1526_v61  ;;  %v1544_v57 = vld [vmem:[%s4833_s9 + $0x170] sm:$0xff]  ;;  %v1569_v61 = vld [vmem:[%s4833_s9 + $0x238] sm:$0xff] }
 0x43c   : > { %1484 = vst [vmem:[#allocation3 + $0x18] sm:$0xfe] %v1474_v10  ;;  %1490 = vst [vmem:[#allocation3 + $0x40] sm:$0x1] %v1474_v10  ;;  %3022 = vmatprep.mubr.msk.f32.mxu0 %vm3468_vm1, %v4328_v39  ;;  %v3327_v9 = vpack.c.bf16 %v1551_v1, %v1550_v0  ;;  %v1534_v10 = vld [vmem:[%s4833_s9 + $0x120] sm:$0xff]  ;;  %v1568_v60 = vld [vmem:[%s4833_s9 + $0x230] sm:$0xff] }
 0x43d   : > { %v2619_v63 = vld [vmem:[%s4833_s9 + $0x508] sm:$0xff]  ;;  %v2650_v0 = vld [vmem:[%s4833_s9 + $0x600] sm:$0xff] }
 0x43e   : > { %3280 = vmatpush3.bf16.msra.mxu0 %v3279_v15  ;;  %3294 = vmatpush3.bf16.msra.mxu1 %v3293_v16  ;;  %v1552_v15 = vld [vmem:[%s4833_s9 + $0x1b0] sm:$0xff]  ;;  %v1553_v16 = vld [vmem:[%s4833_s9 + $0x1b8] sm:$0xff]  ;;  %v2651_v1 = vld [vmem:[%s4833_s9 + $0x608] sm:$0xff] }
 0x43f   : > { %3281 = vmatprep.subr.bf16.mxu0 %v3466_v8  ;;  %3296 = vmatprep.subr.bf16.mxu1 %v3295_v18  ;;  %v3329_v18 = vpack.c.bf16 %v1535_v11, %v1534_v10  ;;  %v3331_v21 = vpack.c.bf16 %v1553_v16, %v1552_v15  ;;  %v2603_v10 = vld [vmem:[%s4833_s9 + $0x488] sm:$0xff]  ;;  %v2620_v16 = vld [vmem:[%s4833_s9 + $0x510] sm:$0xff] }
 0x440   : > { %v1446_v36 = vpop.f32.mrb[18].mxu1  ;;  %v2635_v15 = vld [vmem:[%s4833_s9 + $0x588] sm:$0xff] }
 0x441   : > { %v1447_v40 = vadd.f32 %v1446_v36, %v1213_v22  ;;  %v3005_v41 = vpop.f32.mrb[19].mxu1  ;;  %v1513_v22 = vld [vmem:[%s4833_s9 + $0x78] sm:$0xff]  ;;  %v1562_v36 = vld [vmem:[%s4833_s9 + $0x200] sm:$0xff] }
 0x442   : > { %v1494_v42 = vld [vmem:[#allocation3 + $0x8] sm:$0xff]  ;;  %3283 = vmatpush3.bf16.msra.mxu0 %v3282_v25  ;;  %3298 = vmatpush3.bf16.msra.mxu1 %v3297_v26  ;;  %v1554_v25 = vld [vmem:[%s4833_s9 + $0x1c0] sm:$0xff]  ;;  %v1555_v26 = vld [vmem:[%s4833_s9 + $0x1c8] sm:$0xff]  ;;  %v3317_v27 = vpack.c.bf16 %v1513_v22, %v1512_v32 }
 0x443   : > { %v1454_v46 = vmax.f32 %v1447_v40, 0.0  ;;  %1922 = vmatprep.mubr.f32.mxu1 %v1494_v42  ;;  %3284 = vmatprep.subr.bf16.mxu0 %v3466_v8  ;;  %v1496_v2 = vld [vmem:[#allocation3 + $0x18] sm:$0xff]  ;;  %v3335_v30 = vpack.c.bf16 %v1555_v26, %v1554_v25  ;;  %v1540_v41 = vld [vmem:[%s4833_s9 + $0x150] sm:$0xff]  ;;  %v3339_v42 = vpack.c.bf16 %v1557_v34, %v1556_v14  ;;  %v2069_v5 = vld [vmem:[#allocation3 + $0x8] sm:$0xfc] }
 0x444   : > { %3300 = vmatprep.subr.bf16.mxu1 %v3299_v37  ;;  %v1563_v37 = vld [vmem:[%s4833_s9 + $0x208] sm:$0xff]  ;;  %v2074_v6 = vld [vmem:[#allocation3 + $0x30] sm:$0x3]  ;;  %v2076_v12 = vld [vmem:[#allocation3 + $0x40] sm:$0x3] }
 0x445   : > { %v1475_v54 = vrot.slane %v1454_v46, 7  ;;  %v3352_v40 = vpack.c.bf16 %v1563_v37, %v1562_v36  ;;  %v2071_v11 = vld [vmem:[#allocation3 + $0x18] sm:$0xfc]  ;;  %v2621_v32 = vld [vmem:[%s4833_s9 + $0x518] sm:$0xff]  ;;  %v2171_v24 = vrot.slane %v2076_v12, 2  ;;  %v2604_v25 = vld [vmem:[%s4833_s9 + $0x490] sm:$0xff] }
 0x446   : > { %3286 = vmatpush3.bf16.msra.mxu0 %v3285_v43  ;;  %3302 = vmatpush3.bf16.msra.mxu1 %v3301_v44  ;;  %v1541_v43 = vld [vmem:[%s4833_s9 + $0x158] sm:$0xff]  ;;  %v1564_v44 = vld [vmem:[%s4833_s9 + $0x210] sm:$0xff]  ;;  %v2170_v23 = vrot.slane %v2071_v11, 2  ;;  %v1495_v31 = vld [vmem:[#allocation3 + $0x10] sm:$0xff]  ;;  %v3367_v37 = vpack.c.bf16 %v2621_v32, %v2620_v16 }
 0x447   : > { %1486 = vst.msk [vmem:[#allocation3 + $0x20] sm:$0xfe] %vm1485_vm14, %v1475_v54  ;;  %3304 = vmatprep.subr.bf16.mxu1 %v3303_v47  ;;  %3320 = vmatprep.subr.bf16.mxu0 %v3319_v48  ;;  %v1558_v47 = vld [vmem:[%s4833_s9 + $0x1e0] sm:$0xff]  ;;  %v1559_v48 = vld [vmem:[%s4833_s9 + $0x1e8] sm:$0xff]  ;;  %v3341_v49 = vpack.c.bf16 %v1541_v43, %v1540_v41  ;;  %v3355_v50 = vpack.c.bf16 %v1565_v45, %v1564_v44  ;;  %v2605_v26 = vld [vmem:[%s4833_s9 + $0x498] sm:$0xff] }
 0x448   : > { %1492 = vst.msk [vmem:[#allocation3 + $0x48] sm:$0x1] %vm1491_vm15, %v1475_v54  ;;  %v3343_v52 = vpack.c.bf16 %v1559_v48, %v1558_v47  ;;  %v1566_v54 = vld [vmem:[%s4833_s9 + $0x220] sm:$0xff]  ;;  %v2623_v34 = vld [vmem:[%s4833_s9 + $0x528] sm:$0xff]  ;;  %v3369_v43 = vpack.c.bf16 %v2605_v26, %v2604_v25  ;;  %v2660_v11 = vld [vmem:[%s4833_s9 + $0x650] sm:$0xff] }
 0x449   : > { %3023 = vmatmul.mubr.msk.f32.vlgmr.msra.gmra.mrb[18].mxu0 %vm853_vm3, %v1454_v46  ;;  %v1493_v46 = vld [vmem:[#allocation3] sm:$0xff]  ;;  %v3358_v56 = vpack.c.bf16 %v1567_v33, %v1566_v54  ;;  %v2655_v41 = vld [vmem:[%s4833_s9 + $0x628] sm:$0xff]  ;;  %v2638_v48 = vld [vmem:[%s4833_s9 + $0x5a0] sm:$0xff] }
 0x44a   : > { %3306 = vmatpush3.bf16.msra.mxu1 %v3305_v35  ;;  %3322 = vmatpush3.bf16.msra.mxu0 %v3321_v55  ;;  %v1561_v35 = vld [vmem:[%s4833_s9 + $0x1f8] sm:$0xff]  ;;  %v3345_v55 = vpack.c.bf16 %v1543_v53, %v1542_v51  ;;  %v2607_v47 = vld [vmem:[%s4833_s9 + $0x4a8] sm:$0xff]  ;;  %v2624_v51 = vld [vmem:[%s4833_s9 + $0x530] sm:$0xff] }
 0x44b   : > { %1992 = vmatprep.mubr.f32.mxu0 %v1496_v2  ;;  %3308 = vmatprep.subr.bf16.mxu1 %v3307_v58  ;;  %v1545_v58 = vld [vmem:[%s4833_s9 + $0x178] sm:$0xff]  ;;  %v3347_v59 = vpack.c.bf16 %v1561_v35, %v1560_v20  ;;  %v2656_v53 = vld [vmem:[%s4833_s9 + $0x630] sm:$0xff]  ;;  %v2663_v25 = vld [vmem:[%s4833_s9 + $0x668] sm:$0xff] }
 0x44c   : > { %3324 = vmatprep.subr.bf16.mxu0 %v3323_v62  ;;  %v2618_v62 = vld [vmem:[%s4833_s9 + $0x500] sm:$0xff]  ;;  %v3349_v2 = vpack.c.bf16 %v1545_v58, %v1544_v57  ;;  %v2657_v54 = vld [vmem:[%s4833_s9 + $0x638] sm:$0xff]  ;;  %v2640_v57 = vld [vmem:[%s4833_s9 + $0x5b0] sm:$0xff] }
 0x44d   : > { %v3407_v58 = vpack.c.bf16 %v2657_v54, %v2656_v53  ;;  %v2661_v12 = vld [vmem:[%s4833_s9 + $0x658] sm:$0xff]  ;;  %v2644_v32 = vld [vmem:[%s4833_s9 + $0x5d0] sm:$0xff]  ;;  %v2075_v53 = vld [vmem:[#allocation3 + $0x38] sm:$0x3] }
 0x44e   : > { %3310 = vmatpush3.bf16.msra.mxu1 %v3309_v3  ;;  %3326 = vmatpush3.bf16.msra.mxu0 %v3325_v4  ;;  %v3361_v3 = vpack.c.bf16 %v1569_v61, %v1568_v60  ;;  %v2602_v4 = vld [vmem:[%s4833_s9 + $0x480] sm:$0xff]  ;;  %v1497_v36 = vld [vmem:[#allocation3 + $0x20] sm:$0xff]  ;;  %v2627_v61 = vld [vmem:[%s4833_s9 + $0x548] sm:$0xff] }
 0x44f   : > { %3312 = vmatprep.subr.bf16.mxu1 %v3311_v7  ;;  %3328 = vmatprep.subr.bf16.mxu0 %v3327_v9  ;;  %v3363_v7 = vpack.c.bf16 %v2619_v63, %v2618_v62  ;;  %v3395_v9 = vpack.c.bf16 %v2651_v1, %v2650_v0  ;;  %v3365_v22 = vpack.c.bf16 %v2603_v10, %v2602_v4  ;;  %v2626_v60 = vld [vmem:[%s4833_s9 + $0x540] sm:$0xff]  ;;  %v2659_v63 = vld [vmem:[%s4833_s9 + $0x648] sm:$0xff]  ;;  %v2629_v10 = vld [vmem:[%s4833_s9 + $0x558] sm:$0xff] }
 0x450   : > { %v2658_v62 = vld [vmem:[%s4833_s9 + $0x640] sm:$0xff]  ;;  %v2611_v4 = vld [vmem:[%s4833_s9 + $0x4c8] sm:$0xff] }
 0x452   : > { %3314 = vmatpush3.bf16.msra.mxu1 %v3313_v17  ;;  %3330 = vmatpush3.bf16.msra.mxu0 %v3329_v18  ;;  %v2164_v17 = vrot.slane %v2069_v5, 2  ;;  %v2165_v18 = vrot.slane %v2074_v6, 2  ;;  %v2642_v5 = vld [vmem:[%s4833_s9 + $0x5c0] sm:$0xff]  ;;  %v3411_v6 = vpack.c.bf16 %v2659_v63, %v2658_v62 }
 0x453   : > { %3316 = vmatprep.subr.bf16.mxu1 %v3315_v19  ;;  %3332 = vmatprep.subr.bf16.mxu0 %v3331_v21  ;;  %v2652_v19 = vld [vmem:[%s4833_s9 + $0x610] sm:$0xff]  ;;  %v2653_v21 = vld [vmem:[%s4833_s9 + $0x618] sm:$0xff] }
 0x454   : > { %v3399_v14 = vpack.c.bf16 %v2653_v21, %v2652_v19  ;;  %v3415_v19 = vpack.c.bf16 %v2661_v12, %v2660_v11  ;;  %v2645_v21 = vld [vmem:[%s4833_s9 + $0x5d8] sm:$0xff] }
 0x456   : > { %3318 = vmatpush3.bf16.msra.mxu1 %v3317_v27  ;;  %3334 = vmatpush3.bf16.msra.mxu0 %v3333_v28  ;;  %v3397_v27 = vpack.c.bf16 %v2635_v15, %v2634_v13  ;;  %v2636_v28 = vld [vmem:[%s4833_s9 + $0x590] sm:$0xff] }
 0x457   : > { %3336 = vmatprep.subr.bf16.mxu0 %v3335_v30  ;;  %3351 = vmatprep.subr.bf16.mxu1 %v3466_v8  ;;  %v2622_v30 = vld [vmem:[%s4833_s9 + $0x520] sm:$0xff]  ;;  %v3401_v44 = vpack.c.bf16 %v2637_v29, %v2636_v28 }
 0x458   : > { %v3371_v45 = vpack.c.bf16 %v2623_v34, %v2622_v30  ;;  %v2614_v29 = vld [vmem:[%s4833_s9 + $0x4e0] sm:$0xff]  ;;  %v2615_v30 = vld [vmem:[%s4833_s9 + $0x4e8] sm:$0xff]  ;;  %v2633_v34 = vld [vmem:[%s4833_s9 + $0x578] sm:$0xff] }
 0x459   : > { %1923 = vmatmul.mubr.f32.vlgmr.msra.gmra.mrb[22].mxu1 %v1493_v46  ;;  %v2606_v46 = vld [vmem:[%s4833_s9 + $0x4a0] sm:$0xff] }
 0x45a   : > { %3338 = vmatpush3.bf16.msra.mxu0 %v3337_v38  ;;  %3353 = vmatpush3.bf16.msra.mxu1 %v3352_v40  ;;  %v2166_v38 = vsel %vm1222_vm9, %v2164_v17, %v2165_v18  ;;  %v2654_v40 = vld [vmem:[%s4833_s9 + $0x620] sm:$0xff]  ;;  %v3373_v33 = vpack.c.bf16 %v2607_v47, %v2606_v46  ;;  %v2612_v17 = vld [vmem:[%s4833_s9 + $0x4d0] sm:$0xff]  ;;  %v2613_v18 = vld [vmem:[%s4833_s9 + $0x4d8] sm:$0xff] }
 0x45b   : > { %3340 = vmatprep.subr.bf16.mxu0 %v3339_v42  ;;  %3354 = vmatprep.subr.bf16.mxu1 %v3466_v8  ;;  %v2172_v42 = vsel %vm1222_vm9, %v2170_v23, %v2171_v24  ;;  %v2631_v23 = vld [vmem:[%s4833_s9 + $0x568] sm:$0xff]  ;;  %v2662_v24 = vld [vmem:[%s4833_s9 + $0x660] sm:$0xff]  ;;  %v3385_v26 = vpack.c.bf16 %v2613_v18, %v2612_v17  ;;  %v2648_v47 = vld [vmem:[%s4833_s9 + $0x5f0] sm:$0xff] }
 0x45c   : > { %3041 = vmatprep.mubr.msk.f32.mxu1 %vm3468_vm1, %v4328_v39 }
 0x45e   : > { %3342 = vmatpush3.bf16.msra.mxu0 %v3341_v49  ;;  %3356 = vmatpush3.bf16.msra.mxu1 %v3355_v50  ;;  %v3403_v49 = vpack.c.bf16 %v2655_v41, %v2654_v40  ;;  %v2639_v50 = vld [vmem:[%s4833_s9 + $0x5a8] sm:$0xff]  ;;  %v2665_v40 = vld [vmem:[%s4833_s9 + $0x678] sm:$0xff]  ;;  %v3389_v41 = vpack.c.bf16 %v2615_v30, %v2614_v29 }
 0x45f   : > { %3344 = vmatprep.subr.bf16.mxu0 %v3343_v52  ;;  %3357 = vmatprep.subr.bf16.mxu1 %v3466_v8  ;;  %v2625_v52 = vld [vmem:[%s4833_s9 + $0x538] sm:$0xff]  ;;  %v3405_v20 = vpack.c.bf16 %v2639_v50, %v2638_v48 }
 0x460   : > { %v3375_v35 = vpack.c.bf16 %v2625_v52, %v2624_v51  ;;  %v2649_v48 = vld [vmem:[%s4833_s9 + $0x5f8] sm:$0xff]  ;;  %v2070_v52 = vld [vmem:[#allocation3 + $0x10] sm:$0xfc] }
 0x461   : > { %v2073_v50 = vld [vmem:[#allocation3 + $0x28] sm:$0x3]  ;;  %v3425_v54 = vpack.c.bf16 %v2649_v48, %v2648_v47 }
 0x462   : > { %3346 = vmatpush3.bf16.msra.mxu0 %v3345_v55  ;;  %3359 = vmatpush3.bf16.msra.mxu1 %v3358_v56  ;;  %v2608_v55 = vld [vmem:[%s4833_s9 + $0x4b0] sm:$0xff]  ;;  %v2609_v56 = vld [vmem:[%s4833_s9 + $0x4b8] sm:$0xff] }
 0x463   : > { %3348 = vmatprep.subr.bf16.mxu0 %v3347_v59  ;;  %3360 = vmatprep.subr.bf16.mxu1 %v3466_v8  ;;  %v2641_v59 = vld [vmem:[%s4833_s9 + $0x5b8] sm:$0xff]  ;;  %v3377_v0 = vpack.c.bf16 %v2609_v56, %v2608_v55  ;;  %v2162_v55 = vrot.slane %v2073_v50, 2  ;;  %v2167_v56 = vrot.slane %v2070_v52, 2 }
 0x464   : > { %v3409_v1 = vpack.c.bf16 %v2641_v59, %v2640_v57  ;;  %v2168_v57 = vrot.slane %v2075_v53, 2  ;;  %v2668_v59 = vld [vmem:[%s4833_s9 + $0x690] sm:$0xff] }
 0x466   : > { %3350 = vmatpush3.bf16.msra.mxu0 %v3349_v2  ;;  %3362 = vmatpush3.bf16.msra.mxu1 %v3361_v3  ;;  %v3379_v2 = vpack.c.bf16 %v2627_v61, %v2626_v60  ;;  %v2610_v3 = vld [vmem:[%s4833_s9 + $0x4c0] sm:$0xff]  ;;  %v2669_v60 = vld [vmem:[%s4833_s9 + $0x698] sm:$0xff]  ;;  %v2169_v62 = vsel %vm1222_vm9, %v2167_v56, %v2168_v57 }
 0x467   : > { %3364 = vmatprep.subr.bf16.mxu0 %v3363_v7  ;;  %3396 = vmatprep.subr.bf16.mxu1 %v3395_v9  ;;  %v2643_v7 = vld [vmem:[%s4833_s9 + $0x5c8] sm:$0xff]  ;;  %v2628_v9 = vld [vmem:[%s4833_s9 + $0x550] sm:$0xff]  ;;  %v3381_v13 = vpack.c.bf16 %v2611_v4, %v2610_v3  ;;  %v3431_v63 = vpack.c.bf16 %v2669_v60, %v2668_v59  ;;  %v2673_v4 = vld [vmem:[%s4833_s9 + $0x6b8] sm:$0xff] }
 0x468   : > { %v3413_v15 = vpack.c.bf16 %v2643_v7, %v2642_v5  ;;  %v3383_v16 = vpack.c.bf16 %v2629_v10, %v2628_v9  ;;  %v2672_v3 = vld [vmem:[%s4833_s9 + $0x6b0] sm:$0xff] }
 0x469   : > { %1993 = vmatmul.mubr.f32.vlgmr.msra.gmra.mrb[20].mxu0 %v1495_v31  ;;  %3042 = vmatmul.mubr.msk.f32.vlgmr.msra.gmra.mrb[24].mxu1 %vm853_vm3, %v1497_v36  ;;  %v2646_v31 = vld [vmem:[%s4833_s9 + $0x5e0] sm:$0xff]  ;;  %v3419_v36 = vpack.c.bf16 %v2663_v25, %v2662_v24  ;;  %v2072_v5 = vld [vmem:[#allocation3 + $0x20] sm:$0xfc]  ;;  %v3437_v7 = vpack.c.bf16 %v2673_v4, %v2672_v3 }
 0x46a   : > { %3366 = vmatpush3.bf16.msra.mxu0 %v3365_v22  ;;  %2246 = vmatprep.mubr.f32.mxu0 %v2166_v38  ;;  %v2630_v22 = vld [vmem:[%s4833_s9 + $0x560] sm:$0xff]  ;;  %v2664_v38 = vld [vmem:[%s4833_s9 + $0x670] sm:$0xff]  ;;  %v2173_v9 = vrot.slane %v2072_v5, 2 }
 0x46b   : > { %3398 = vmatpush3.bf16.msra.mxu1 %v3397_v27  ;;  %2316 = vmatprep.mubr.f32.mxu1 %v2172_v42  ;;  %v3417_v27 = vpack.c.bf16 %v2645_v21, %v2644_v32  ;;  %v3387_v28 = vpack.c.bf16 %v2631_v23, %v2630_v22  ;;  %v3423_v46 = vpack.c.bf16 %v2665_v40, %v2664_v38 }
 0x46c   : > { %3368 = vmatprep.subr.bf16.mxu0 %v3367_v37  ;;  %3400 = vmatprep.subr.bf16.mxu1 %v3399_v14  ;;  %v2647_v37 = vld [vmem:[%s4833_s9 + $0x5e8] sm:$0xff]  ;;  %v2632_v14 = vld [vmem:[%s4833_s9 + $0x570] sm:$0xff] }
 0x46d   : > { %v3421_v42 = vpack.c.bf16 %v2647_v37, %v2646_v31 }
 0x46e   : > { %3370 = vmatpush3.bf16.msra.mxu0 %v3369_v43  ;;  %v3391_v43 = vpack.c.bf16 %v2633_v34, %v2632_v14 }
 0x46f   : > { %3402 = vmatpush3.bf16.msra.mxu1 %v3401_v44  ;;  %3372 = vmatprep.subr.bf16.mxu0 %v3371_v45  ;;  %v2616_v44 = vld [vmem:[%s4833_s9 + $0x4f0] sm:$0xff]  ;;  %v2617_v45 = vld [vmem:[%s4833_s9 + $0x4f8] sm:$0xff] }
 0x470   : > { %3404 = vmatprep.subr.bf16.mxu1 %v3403_v49  ;;  %v2068_v49 = vld [vmem:[#allocation3] sm:$0xfc]  ;;  %v3393_v51 = vpack.c.bf16 %v2617_v45, %v2616_v44  ;;  %v2401_v45 = vpop.permute.xlu1 %2400 }
 0x472   : > { %3374 = vmatpush3.bf16.msra.mxu0 %v3373_v33  ;;  %v2666_v33 = vld [vmem:[%s4833_s9 + $0x680] sm:$0xff] }
 0x473   : > { %3406 = vmatpush3.bf16.msra.mxu1 %v3405_v20  ;;  %3376 = vmatprep.subr.bf16.mxu0 %v3375_v35  ;;  %v2667_v20 = vld [vmem:[%s4833_s9 + $0x688] sm:$0xff]  ;;  %v2161_v35 = vrot.slane %v2068_v49, 2 }
 0x474   : > { %3408 = vmatprep.subr.bf16.mxu1 %v3407_v58  ;;  %v3428_v58 = vpack.c.bf16 %v2667_v20, %v2666_v33 }
 0x475   : > { %v2163_v61 = vsel %vm1222_vm9, %v2161_v35, %v2162_v55 }
 0x476   : > { %3378 = vmatpush3.bf16.msra.mxu0 %v3377_v0  ;;  %v2670_v0 = vld [vmem:[%s4833_s9 + $0x6a0] sm:$0xff] }
 0x477   : > { %3410 = vmatpush3.bf16.msra.mxu1 %v3409_v1  ;;  %3380 = vmatprep.subr.bf16.mxu0 %v3379_v2  ;;  %v2671_v1 = vld [vmem:[%s4833_s9 + $0x6a8] sm:$0xff] }
 0x478   : > { %3412 = vmatprep.subr.bf16.mxu1 %v3411_v6  ;;  %v3434_v2 = vpack.c.bf16 %v2671_v1, %v2670_v0  ;;  %v2077_v6 = vld [vmem:[#allocation3 + $0x48] sm:$0x3] }
 0x47a   : > { %3382 = vmatpush3.bf16.msra.mxu0 %v3381_v13 }
 0x47b   : > { %3414 = vmatpush3.bf16.msra.mxu1 %v3413_v15  ;;  %3384 = vmatprep.subr.bf16.mxu0 %v3383_v16 }
 0x47c   : > { %3416 = vmatprep.subr.bf16.mxu1 %v3415_v19 }
 0x47e   : > { %3386 = vmatpush3.bf16.msra.mxu0 %v3385_v26 }
 0x47f   : > { %3418 = vmatpush3.bf16.msra.mxu1 %v3417_v27  ;;  %3388 = vmatprep.subr.bf16.mxu0 %v3387_v28 }
 0x480   : > { %3420 = vmatprep.subr.bf16.mxu1 %v3419_v36 }
 0x482   : > { %3390 = vmatpush3.bf16.msra.mxu0 %v3389_v41 }
 0x483   : > { %3422 = vmatpush3.bf16.msra.mxu1 %v3421_v42  ;;  %3392 = vmatprep.subr.bf16.mxu0 %v3391_v43 }
 0x484   : > { %3424 = vmatprep.subr.bf16.mxu1 %v3423_v46 }
 0x486   : > { %3394 = vmatpush3.bf16.msra.mxu0 %v3393_v51 }
 0x487   : > { %3426 = vmatpush3.bf16.msra.mxu1 %v3425_v54  ;;  %3427 = vmatprep.subr.bf16.mxu0 %v3466_v8 }
 0x489   : > { %2247 = vmatmul.mubr.f32.vlgmr.msra.gmra.mrb[22].mxu0 %v2163_v61 }
 0x48a   : > { %2317 = vmatmul.mubr.f32.vlgmr.msra.gmra.mrb[26].mxu1 %v2169_v62  ;;  %3429 = vmatpush3.bf16.msra.mxu0 %v3428_v58 }
 0x48b   : > { %3430 = vmatprep.subr.bf16.mxu0 %v3466_v8  ;;  %3060 = vmatprep.mubr.msk.f32.mxu0 %vm3468_vm1, %v4328_v39  ;;  %v2174_v39 = vrot.slane %v2077_v6, 2 }
 0x48d   : > { %v2175_v10 = vsel %vm1222_vm9, %v2173_v9, %v2174_v39 }
 0x48e   : > { %3432 = vmatpush3.bf16.msra.mxu0 %v3431_v63 }
 0x48f   : > { %3433 = vmatprep.subr.bf16.mxu0 %v3466_v8 }
 0x492   : > { %3435 = vmatpush3.bf16.msra.mxu0 %v3434_v2 }
 0x493   : > { %3436 = vmatprep.subr.bf16.mxu0 %v3466_v8 }
 0x496   : > { %3438 = vmatpush3.bf16.msra.mxu0 %v3437_v7 }
 0x499   : > { %3061 = vmatmul.mubr.msk.f32.vlgmr.msra.gmra.mrb[24].mxu0 %vm853_vm3, %v2175_v10 }
 0x50c   : > { %v2739_v11 = vpop.f32.mrb[16].mxu0  ;;  %v2774_v12 = vpop.f32.mrb[20].mxu1 }
 0x50d   : > { %v2740_v13 = vpop.f32.mrb[17].mxu0  ;;  %v2775_v15 = vpop.f32.mrb[21].mxu1 }
 0x50e   : > { %v2741_v16 = vadd.f32 %v2740_v13, %v2739_v11  ;;  %v2776_v17 = vadd.f32 %v2775_v15, %v2774_v12 }
 0x510   : > { %v1782_v18 = vadd.f32 %v2776_v17, %v2741_v16 }
 0x51c   : > { %v1851_v32 = vpop.f32.mrb[18].mxu0 }
 0x51d   : > { %v1852_v19 = vadd.f32 %v1851_v32, %v1782_v18  ;;  %v3024_v21 = vpop.f32.mrb[19].mxu0 }
 0x52c   : > { %v2818_v22 = vpop.f32.mrb[22].mxu1 }
 0x52d   : > { %v2819_v23 = vpop.f32.mrb[23].mxu1 }
 0x52e   : > { %v2820_v8 = vadd.f32 %v2819_v23, %v2818_v22 }
 0x530   : > { %v1925_v24 = vadd.f32 %v2820_v8, %v1852_v19 }
 0x53c   : > { %v2853_v25 = vpop.f32.mrb[20].mxu0  ;;  %v2064_v26 = vpop.f32.mrb[24].mxu1 }
 0x53d   : > { %v2854_v27 = vpop.f32.mrb[21].mxu0  ;;  %v3043_v28 = vpop.f32.mrb[25].mxu1 }
 0x53e   : > { %v2855_v29 = vadd.f32 %v2854_v27, %v2853_v25 }
 0x540   : > { %v1995_v30 = vadd.f32 %v2855_v29, %v1925_v24 }
 0x542   : > { %v2065_v31 = vadd.f32 %v2064_v26, %v1995_v30 }
 0x55c   : > { %v2897_v36 = vpop.f32.mrb[22].mxu0 }
 0x55d   : > { %v2932_v37 = vpop.f32.mrb[26].mxu1  ;;  %v2898_v14 = vpop.f32.mrb[23].mxu0 }
 0x55e   : > { %v2899_v34 = vadd.f32 %v2898_v14, %v2897_v36  ;;  %v2933_v38 = vpop.f32.mrb[27].mxu1 }
 0x55f   : > { %v2934_v40 = vadd.f32 %v2933_v38, %v2932_v37 }
 0x561   : > { %v2319_v41 = vadd.f32 %v2934_v40, %v2899_v34 }
 0x56c   : > { %v2388_v42 = vpop.f32.mrb[24].mxu0 }
 0x56d   : > { %v2389_v43 = vadd.f32 %v2388_v42, %v2319_v41  ;;  %v3062_v44 = vpop.f32.mrb[25].mxu0 }
 0x56f   : > { %v2392_v46 = vadd.f32 %v2389_v43, %v2065_v31 }
 0x571   : > { %v2403_v47 = vadd.f32 %v2401_v45, %v2392_v46 }
 0x573   : > { %v2404_v48 = vmax.f32 %v2403_v47, 0.0 }
 0x575   : > { %2406 = vst.msk [vmem:[%s502_s27] sm:$0xff] %vm2405_vm0, %v2404_v48 }
 0x576 PF: > { %s28_s20 = sadd.s32 1, %s3464_s20  }
 0x577   : > { %p25_p4 = scmp.ge.s32.totalorder %s28_s20, 4  }
 0x579   :  { %27 = sbr.rel (!%p25_p4) target bundleno = 3 (0x3), region = 120 }

</bundles_post_ra>
